<compile_context>
chip_gen: v7x
topology: tpu7x:2x2x1
jax: 0.10.0
libtpu: 0.0.40
codegen_flags: <defaults>
</compile_context>

<pallas_src>
import functools
import math

import jax
import jax.numpy as jnp
from jax.experimental import pallas as pl
from jax.experimental.pallas import tpu as pltpu

MXU_DTYPE = jnp.bfloat16      # matmul operand dtype (f32 accumulation via preferred_element_type)
WEIGHT_DTYPE = jnp.bfloat16   # weights stored in HBM as bf16 (halves weight HBM traffic)
NEG_INF = -1e9                # additive-mask "masked" value (not -inf: keeps softmax finite)


def _query_vmem_capacity():
    try:
        return int(pltpu.get_tpu_info().vmem_capacity_bytes)
    except Exception:          # query unavailable -> conservative (v7x-sized) default
        return 64 << 20


_VMEM_CAPACITY = _query_vmem_capacity()
_BIG_VMEM = _VMEM_CAPACITY > (64 << 20)            # v5e/v6e: 128 MiB, v7x: 64 MiB
_VMEM_LIMIT = int(min(_VMEM_CAPACITY, 128 << 20) * 3 // 4)

# Generation-aware tile caps (feedback: cap tiles at ~half of v6e's on v7x).
_ROW_CANDIDATES = (512, 256, 128, 64, 32, 16, 8) if _BIG_VMEM else (256, 128, 64, 32, 16, 8)
_COL_CANDIDATES = (512, 256, 128) if _BIG_VMEM else (256, 128)
_K_CANDIDATES = (512, 256, 128)


def _pick_tile(dim, candidates):
    """Largest candidate that evenly divides `dim`; else the full extent.
    Candidates keep the (8,128) tiling constraint (rows multiple of 8, cols of 128)."""
    # TODO(synk): large non-divisible dims fall back to the full extent; pad instead if
    # that ever exceeds the VMEM budget.
    for t in candidates:
        if dim >= t and dim % t == 0:
            return t
    return dim


def _compiler_params(semantics):
    return pltpu.CompilerParams(dimension_semantics=semantics,
                                vmem_limit_bytes=_VMEM_LIMIT)


# ---------------------------------------------------------------------------
# Linear (matmul + bias [+ ReLU]) with K-tiled reduction + f32 accumulator
# ---------------------------------------------------------------------------
def _linear_kernel(x_ref, w_ref, b_ref, o_ref, acc_ref, *, activation):
    @pl.when(pl.program_id(2) == 0)
    def _():
        acc_ref[...] = jnp.zeros_like(acc_ref)

    acc_ref[...] += jnp.dot(
        x_ref[...].astype(MXU_DTYPE), w_ref[...].astype(MXU_DTYPE),
        preferred_element_type=jnp.float32)

    @pl.when(pl.program_id(2) == pl.num_programs(2) - 1)
    def _():
        y = acc_ref[...] + b_ref[...].astype(jnp.float32)
        if activation == "relu":
            y = jnp.maximum(y, 0.0)
        o_ref[...] = y.astype(o_ref.dtype)


def linear(x, w, b, activation=None):
    """x: (M, K) f32, w: (K, N) bf16, b: (N,) f32 -> (M, N) f32."""
    M, K = x.shape
    N = w.shape[1]
    tm = _pick_tile(M, _ROW_CANDIDATES)
    tn = _pick_tile(N, _COL_CANDIDATES)
    tk = _pick_tile(K, _K_CANDIDATES)
    kernel = functools.partial(_linear_kernel, activation=activation)
    return pl.pallas_call(
        kernel,
        out_shape=jax.ShapeDtypeStruct((M, N), x.dtype),
        grid=(M // tm, N // tn, K // tk),
        in_specs=[
            pl.BlockSpec((tm, tk), lambda i, j, k: (i, k)),
            pl.BlockSpec((tk, tn), lambda i, j, k: (k, j)),
            pl.BlockSpec((1, tn), lambda i, j, k: (0, j)),
        ],
        out_specs=pl.BlockSpec((tm, tn), lambda i, j, k: (i, j)),
        scratch_shapes=[pltpu.VMEM((tm, tn), jnp.float32)],
        compiler_params=_compiler_params(("parallel", "parallel", "arbitrary")),
    )(x, w, b.reshape(1, N))


# ---------------------------------------------------------------------------
# Fused FFN: relu(x @ w1 + b1) @ w2 + b2 in one kernel (hidden never hits HBM)
# ---------------------------------------------------------------------------
def _ffn_kernel(x_ref, w1_ref, b1_ref, w2_ref, b2_ref, o_ref, acc_ref):
    @pl.when(pl.program_id(1) == 0)
    def _():
        acc_ref[...] = jnp.zeros_like(acc_ref)

    h = jnp.dot(x_ref[...].astype(MXU_DTYPE), w1_ref[...].astype(MXU_DTYPE),
                preferred_element_type=jnp.float32) + b1_ref[...].astype(jnp.float32)
    h = jnp.maximum(h, 0.0)
    acc_ref[...] += jnp.dot(h.astype(MXU_DTYPE), w2_ref[...].astype(MXU_DTYPE),
                            preferred_element_type=jnp.float32)

    @pl.when(pl.program_id(1) == pl.num_programs(1) - 1)
    def _():
        o_ref[...] = (acc_ref[...] + b2_ref[...].astype(jnp.float32)).astype(o_ref.dtype)


def ffn(x2, p):
    """x2: (M, E).  Grid: (row tiles, hidden tiles [reduction over ffn_dim])."""
    M, E = x2.shape
    F = p["w1"].shape[1]
    tm = _pick_tile(M, _ROW_CANDIDATES if not _BIG_VMEM else (256, 128, 64, 32, 16, 8))
    tf = _pick_tile(F, _COL_CANDIDATES)
    # TODO(synk): E (embed) is untiled inside this kernel; tile it too for embed >~2k.
    return pl.pallas_call(
        _ffn_kernel,
        out_shape=jax.ShapeDtypeStruct((M, E), x2.dtype),
        grid=(M // tm, F // tf),
        in_specs=[
            pl.BlockSpec((tm, E), lambda i, f: (i, 0)),
            pl.BlockSpec((E, tf), lambda i, f: (0, f)),
            pl.BlockSpec((1, tf), lambda i, f: (0, f)),
            pl.BlockSpec((tf, E), lambda i, f: (f, 0)),
            pl.BlockSpec((1, E), lambda i, f: (0, 0)),
        ],
        out_specs=pl.BlockSpec((tm, E), lambda i, f: (i, 0)),
        scratch_shapes=[pltpu.VMEM((tm, E), jnp.float32)],
        compiler_params=_compiler_params(("parallel", "arbitrary")),
    )(x2, p["w1"], p["b1"].reshape(1, F), p["w2"], p["b2"].reshape(1, E))


# ---------------------------------------------------------------------------
# Residual-add + LayerNorm (fused)
# ---------------------------------------------------------------------------
def _add_layernorm_kernel(x_ref, r_ref, g_ref, b_ref, o_ref, *, eps):
    x = x_ref[...].astype(jnp.float32) + r_ref[...].astype(jnp.float32)
    mean = jnp.mean(x, axis=-1, keepdims=True)
    var = jnp.mean(jnp.square(x - mean), axis=-1, keepdims=True)
    y = (x - mean) * jax.lax.rsqrt(var + eps)
    o_ref[...] = (y * g_ref[...] + b_ref[...]).astype(o_ref.dtype)


def add_layer_norm(x, residual, gamma, beta, eps):
    """LayerNorm(x + residual) over the last dim; x/residual: (B, S, E)."""
    B, S, E = x.shape
    M = B * S
    tm = _pick_tile(M, _ROW_CANDIDATES)
    out = pl.pallas_call(
        functools.partial(_add_layernorm_kernel, eps=eps),
        out_shape=jax.ShapeDtypeStruct((M, E), x.dtype),
        grid=(M // tm,),
        in_specs=[
            pl.BlockSpec((tm, E), lambda i: (i, 0)),
            pl.BlockSpec((tm, E), lambda i: (i, 0)),
            pl.BlockSpec((1, E), lambda i: (0, 0)),
            pl.BlockSpec((1, E), lambda i: (0, 0)),
        ],
        out_specs=pl.BlockSpec((tm, E), lambda i: (i, 0)),
        compiler_params=_compiler_params(("parallel",)),
    )(x.reshape(M, E), residual.reshape(M, E),
      gamma.reshape(1, E), beta.reshape(1, E))
    return out.reshape(B, S, E)


# ---------------------------------------------------------------------------
# Flash-style attention: all heads of one batch row per grid step, online softmax
# ---------------------------------------------------------------------------
def _flash_attn_kernel(q_ref, k_ref, v_ref, *rest, scale, heads, head_dim,
                       tq, tk, mask_mode):
    if mask_mode == "array":
        mask_ref, o_ref, m_sc, l_sc, acc_sc = rest
    else:
        o_ref, m_sc, l_sc, acc_sc = rest
    ki = pl.program_id(2)

    @pl.when(ki == 0)
    def _():
        m_sc[...] = jnp.full(m_sc.shape, -jnp.inf, m_sc.dtype)
        l_sc[...] = jnp.zeros(l_sc.shape, l_sc.dtype)
        acc_sc[...] = jnp.zeros(acc_sc.shape, acc_sc.dtype)

    # Additive bias for this (q block, kv block), shared by all heads in the block.
    if mask_mode == "causal":
        # Generated in-kernel (a few VPU ops): no O(Sq*Sk) mask in HBM, no mask DMA.
        row = pl.program_id(1) * tq + jax.lax.broadcasted_iota(jnp.int32, (tq, tk), 0)
        col = ki * tk + jax.lax.broadcasted_iota(jnp.int32, (tq, tk), 1)
        bias = jnp.where(row >= col, 0.0, NEG_INF).astype(jnp.float32)
    elif mask_mode == "array":
        bias = mask_ref[...].astype(jnp.float32)
    else:
        bias = None

    for h in range(heads):                                  # static (unrolled) head loop
        if heads == 1:
            q_h, k_h, v_h = q_ref[0], k_ref[0], v_ref[0]
        else:
            sl = pl.ds(h * head_dim, head_dim)
            q_h, k_h, v_h = q_ref[0, :, sl], k_ref[0, :, sl], v_ref[0, :, sl]
        # Softmax scale folded into q (tq*Dh multiplies instead of tq*tk per kv block).
        q_h = (q_h * scale).astype(MXU_DTYPE)
        s = jnp.dot(q_h, k_h.astype(MXU_DTYPE).T,
                    preferred_element_type=jnp.float32)      # (tq, tk)
        if bias is not None:
            s = s + bias

        m_prev = m_sc[h]
        m_new = jnp.maximum(m_prev, jnp.max(s, axis=-1, keepdims=True))
        alpha = jnp.exp(m_prev - m_new)
        p = jnp.exp(s - m_new)
        l_sc[h] = alpha * l_sc[h] + jnp.sum(p, axis=-1, keepdims=True)
        acc_sc[h] = alpha * acc_sc[h] + jnp.dot(
            p.astype(MXU_DTYPE), v_h.astype(MXU_DTYPE),
            preferred_element_type=jnp.float32)
        m_sc[h] = m_new

    @pl.when(ki == pl.num_programs(2) - 1)
    def _():
        # Exact divide (epilogue only); single lane-dense (tq, heads*head_dim) store.
        if heads == 1:
            o_ref[0] = (acc_sc[0] / l_sc[0]).astype(o_ref.dtype)
        else:
            parts = [acc_sc[h] / l_sc[h] for h in range(heads)]
            o_ref[0] = jnp.concatenate(parts, axis=-1).astype(o_ref.dtype)


def flash_attention(q_arr, q_blk, k_arr, k_blk, v_arr, v_blk, mask, *,
                    heads_per_block, head_dim, scale):
    """Online-softmax attention.

    q_arr: (G, Sq, nq*E), k_arr/v_arr: (G, Sk, nk*E) with E = heads_per_block*head_dim;
    the E-wide column block `q_blk`/`k_blk`/`v_blk` holds Q/K/V (so fused QKV / KV
    projection outputs are consumed directly, sliced by the BlockSpec during DMA).
    G is batch (packed path) or batch*heads (fallback path with heads_per_block=1).
    mask: None | "causal" | (Sq, Sk) additive f32 array (0 = keep, -1e9 = masked).
    Returns (G, Sq, E).
    """
    # TODO(synk): per-batch key-padding masks of shape (B, Sq, Sk) are not supported.
    G, Sq, _ = q_arr.shape
    Sk = k_arr.shape[1]
    E = heads_per_block * head_dim
    tq = _pick_tile(Sq, (256, 128, 64, 32, 16, 8))
    tk = _pick_tile(Sk, (512, 256, 128))
    mask_mode = None if mask is None else ("causal" if isinstance(mask, str) else "array")

    kernel = functools.partial(
        _flash_attn_kernel, scale=scale, heads=heads_per_block, head_dim=head_dim,
        tq=tq, tk=tk, mask_mode=mask_mode)

    in_specs = [
        pl.BlockSpec((1, tq, E), lambda g, qi, ki: (g, qi, q_blk)),
        pl.BlockSpec((1, tk, E), lambda g, qi, ki: (g, ki, k_blk)),
        pl.BlockSpec((1, tk, E), lambda g, qi, ki: (g, ki, v_blk)),
    ]
    args = [q_arr, k_arr, v_arr]
    if mask_mode == "array":
        in_specs.append(pl.BlockSpec((tq, tk), lambda g, qi, ki: (qi, ki)))
        args.append(mask.astype(jnp.float32))

    return pl.pallas_call(
        kernel,
        out_shape=jax.ShapeDtypeStruct((G, Sq, E), q_arr.dtype),
        grid=(G, Sq // tq, Sk // tk),
        in_specs=in_specs,
        out_specs=pl.BlockSpec((1, tq, E), lambda g, qi, ki: (g, qi, 0)),
        scratch_shapes=[
            pltpu.VMEM((heads_per_block, tq, 1), jnp.float32),         # running max
            pltpu.VMEM((heads_per_block, tq, 1), jnp.float32),         # running denom
            pltpu.VMEM((heads_per_block, tq, head_dim), jnp.float32),  # running numerator
        ],
        compiler_params=_compiler_params(("parallel", "parallel", "arbitrary")),
    )(*args)


# ---------------------------------------------------------------------------
# Multi-head attention glue
# ---------------------------------------------------------------------------
def _split_heads(x2, B, S, H, Dh):
    # (B*S, H*Dh) -> (B*H, S, Dh); only used on the non-lane-aligned fallback path.
    return x2.reshape(B, S, H, Dh).transpose(0, 2, 1, 3).reshape(B * H, S, Dh)


def _merge_heads(x3, B, S, H, Dh):
    # (B*H, S, Dh) -> (B*S, H*Dh); only used on the non-lane-aligned fallback path.
    return x3.reshape(B, H, S, Dh).transpose(0, 2, 1, 3).reshape(B * S, H * Dh)


def self_attention(x, p, mask, num_heads):
    B, S, E = x.shape
    Dh = E // num_heads
    scale = 1.0 / math.sqrt(Dh)
    qkv = linear(x.reshape(B * S, E), p["wqkv"], p["bqkv"])            # fused QKV matmul
    if E % 128 == 0:
        # Packed path: all heads per grid step, Q/K/V sliced out of the fused projection
        # by BlockSpec column-block index -> no XLA head split/merge, lane-dense output.
        qkv3 = qkv.reshape(B, S, 3 * E)
        out = flash_attention(qkv3, 0, qkv3, 1, qkv3, 2, mask,
                              heads_per_block=num_heads, head_dim=Dh, scale=scale)
        out2 = out.reshape(B * S, E)
    else:
        # Lane tiling (128) forbids E-wide column blocks of the 3E-wide fused output at
        # small embed dims; fall back to the per-(batch*head) layout via XLA transposes.
        q = _split_heads(qkv[:, 0 * E:1 * E], B, S, num_heads, Dh)
        k = _split_heads(qkv[:, 1 * E:2 * E], B, S, num_heads, Dh)
        v = _split_heads(qkv[:, 2 * E:3 * E], B, S, num_heads, Dh)
        out = flash_attention(q, 0, k, 0, v, 0, mask,
                              heads_per_block=1, head_dim=Dh, scale=scale)
        out2 = _merge_heads(out, B, S, num_heads, Dh)
    return linear(out2, p["wo"], p["bo"]).reshape(B, S, E)


def cross_attention(xq, xkv, p, mask, num_heads):
    B, Sq, E = xq.shape
    Sk = xkv.shape[1]
    Dh = E // num_heads
    scale = 1.0 / math.sqrt(Dh)
    q = linear(xq.reshape(B * Sq, E), p["wq"], p["bq"])                # (B*Sq, E)
    kv = linear(xkv.reshape(B * Sk, E), p["wkv"], p["bkv"])            # fused KV matmul
    if E % 128 == 0:
        q3 = q.reshape(B, Sq, E)
        kv3 = kv.reshape(B, Sk, 2 * E)
        out = flash_attention(q3, 0, kv3, 0, kv3, 1, mask,
                              heads_per_block=num_heads, head_dim=Dh, scale=scale)
        out2 = out.reshape(B * Sq, E)
    else:
        qh = _split_heads(q, B, Sq, num_heads, Dh)
        kh = _split_heads(kv[:, 0:E], B, Sk, num_heads, Dh)
        vh = _split_heads(kv[:, E:2 * E], B, Sk, num_heads, Dh)
        out = flash_attention(qh, 0, kh, 0, vh, 0, mask,
                              heads_per_block=1, head_dim=Dh, scale=scale)
        out2 = _merge_heads(out, B, Sq, num_heads, Dh)
    return linear(out2, p["wo"], p["bo"]).reshape(B, Sq, E)


# ---------------------------------------------------------------------------
# Encoder / decoder blocks (post-LN), dropout = identity (eval mode)
# ---------------------------------------------------------------------------
def encoder_block(x, p, mask, num_heads, eps):
    # TODO(synk): dropout_prob ignored (inference / eval mode -> identity).
    a = self_attention(x, p["sa"], mask, num_heads)
    x = add_layer_norm(a, x, p["ln1_g"], p["ln1_b"], eps)
    B, S, E = x.shape
    f = ffn(x.reshape(B * S, E), p["ffn"]).reshape(B, S, E)
    x = add_layer_norm(f, x, p["ln2_g"], p["ln2_b"], eps)
    return x


def decoder_block(x, memory, p, sa_mask, ca_mask, num_heads, eps):
    a = self_attention(x, p["sa"], sa_mask, num_heads)
    x = add_layer_norm(a, x, p["ln1_g"], p["ln1_b"], eps)
    c = cross_attention(x, memory, p["ca"], ca_mask, num_heads)
    x = add_layer_norm(c, x, p["ln2_g"], p["ln2_b"], eps)
    B, S, E = x.shape
    f = ffn(x.reshape(B * S, E), p["ffn"]).reshape(B, S, E)
    x = add_layer_norm(f, x, p["ln3_g"], p["ln3_b"], eps)
    return x


def transformer_forward(params, src, tgt, src_mask=None, tgt_sa_mask=None,
                        tgt_ca_mask=None, *, num_heads, eps):
    # Masks: None, the string "causal" (generated in-kernel), or an additive (Sq, Sk)
    # float array (0 = keep, -1e9 = masked).
    memory = src
    for p in params["encoder"]:
        memory = encoder_block(memory, p, src_mask, num_heads, eps)
    x = tgt
    for p in params["decoder"]:
        x = decoder_block(x, memory, p, tgt_sa_mask, tgt_ca_mask, num_heads, eps)
    return x


# ---------------------------------------------------------------------------
# Deterministic parameter init (weights stored pre-fused and in bf16)
# ---------------------------------------------------------------------------
def _w(key, shape):
    return (0.02 * jax.random.normal(key, shape, jnp.float32)).astype(WEIGHT_DTYPE)


def _init_self_attn(key, embed_dim):
    ks = jax.random.split(key, 4)
    wq, wk, wv = _w(ks[0], (embed_dim, embed_dim)), _w(ks[1], (embed_dim, embed_dim)), \
        _w(ks[2], (embed_dim, embed_dim))
    return {
        "wqkv": jnp.concatenate([wq, wk, wv], axis=1),
        "bqkv": jnp.zeros((3 * embed_dim,), jnp.float32),
        "wo": _w(ks[3], (embed_dim, embed_dim)),
        "bo": jnp.zeros((embed_dim,), jnp.float32),
    }


def _init_cross_attn(key, embed_dim):
    ks = jax.random.split(key, 4)
    wk, wv = _w(ks[1], (embed_dim, embed_dim)), _w(ks[2], (embed_dim, embed_dim))
    return {
        "wq": _w(ks[0], (embed_dim, embed_dim)),
        "bq": jnp.zeros((embed_dim,), jnp.float32),
        "wkv": jnp.concatenate([wk, wv], axis=1),
        "bkv": jnp.zeros((2 * embed_dim,), jnp.float32),
        "wo": _w(ks[3], (embed_dim, embed_dim)),
        "bo": jnp.zeros((embed_dim,), jnp.float32),
    }


def _init_ffn(key, embed_dim, ffn_dim):
    k1, k2 = jax.random.split(key)
    return {
        "w1": _w(k1, (embed_dim, ffn_dim)),
        "b1": jnp.zeros((ffn_dim,), jnp.float32),
        "w2": _w(k2, (ffn_dim, embed_dim)),
        "b2": jnp.zeros((embed_dim,), jnp.float32),
    }


def init_transformer_params(key, num_enc, num_dec, embed_dim, ffn_dim):
    params = {"encoder": [], "decoder": []}
    for _ in range(num_enc):
        key, k1, k2 = jax.random.split(key, 3)
        params["encoder"].append({
            "sa": _init_self_attn(k1, embed_dim),
            "ffn": _init_ffn(k2, embed_dim, ffn_dim),
            "ln1_g": jnp.ones((embed_dim,), jnp.float32),
            "ln1_b": jnp.zeros((embed_dim,), jnp.float32),
            "ln2_g": jnp.ones((embed_dim,), jnp.float32),
            "ln2_b": jnp.zeros((embed_dim,), jnp.float32),
        })
    for _ in range(num_dec):
        key, k1, k2, k3 = jax.random.split(key, 4)
        params["decoder"].append({
            "sa": _init_self_attn(k1, embed_dim),
            "ca": _init_cross_attn(k2, embed_dim),
            "ffn": _init_ffn(k3, embed_dim, ffn_dim),
            "ln1_g": jnp.ones((embed_dim,), jnp.float32),
            "ln1_b": jnp.zeros((embed_dim,), jnp.float32),
            "ln2_g": jnp.ones((embed_dim,), jnp.float32),
            "ln2_b": jnp.zeros((embed_dim,), jnp.float32),
            "ln3_g": jnp.ones((embed_dim,), jnp.float32),
            "ln3_b": jnp.zeros((embed_dim,), jnp.float32),
        })
    return params


# ---------------------------------------------------------------------------
if __name__ == "__main__":
    # Small config: Transformer(num_encoder_blocks=2, num_decoder_blocks=2,
    #                           embed_dim=32, num_heads=4, ffn_dim=64)
    # At this tiny size everything is launch-bound; tiling logic scales with shape.
    B, S_SRC, S_TGT = 2, 8, 8
    EMBED, HEADS, FFN = 32, 4, 64
    NUM_ENC, NUM_DEC = 2, 2
    EPS = 1e-5

    root = jax.random.PRNGKey(0)
    k_params, k_src, k_tgt = jax.random.split(root, 3)

    params = init_transformer_params(k_params, NUM_ENC, NUM_DEC, EMBED, FFN)
    src = jax.random.normal(k_src, (B, S_SRC, EMBED), jnp.float32)
    tgt = jax.random.normal(k_tgt, (B, S_TGT, EMBED), jnp.float32)

    # Encoder mask: explicit additive array (all zeros => no-op; exercises the
    # array-mask DMA path).  Decoder self-attention: in-kernel generated causal mask.
    src_mask = jnp.zeros((S_SRC, S_SRC), jnp.float32)

    fwd = jax.jit(functools.partial(
        transformer_forward, num_heads=HEADS, eps=EPS,
        tgt_sa_mask="causal", tgt_ca_mask=None))
    out = fwd(params, src, tgt, src_mask)
    out = jax.block_until_ready(out)

    assert out.shape == (B, S_TGT, EMBED)
    assert jnp.all(jnp.isfinite(out))
    print("KERNEL_OK")
</pallas_src>

<mosaic_0001>
module attributes {stable_mosaic.version = 11 : i64} {
  func.func @_linear_kernel(%arg0: i32, %arg1: i32, %arg2: i32, %arg3: memref<16x32xf32, #tpu.memory_space<vmem>>, %arg4: memref<32x96xbf16, #tpu.memory_space<vmem>>, %arg5: memref<1x96xf32, #tpu.memory_space<vmem>>, %arg6: memref<16x96xf32, #tpu.memory_space<vmem>>, %arg7: memref<16x96xf32, #tpu.memory_space<vmem>>) attributes {dimension_semantics = [#tpu.dimension_semantics<parallel>, #tpu.dimension_semantics<parallel>, #tpu.dimension_semantics<arbitrary>], iteration_bounds = array<i64: 1, 1, 1>, scalar_prefetch = 0 : i64, scratch_operands = 1 : i64, tpu.core_type = #tpu.core_type<tc>, window_params = [{transform_indices = @transform_0, window_bounds = array<i64: 16, 32>}, {transform_indices = @transform_1, window_bounds = array<i64: 32, 96>}, {transform_indices = @transform_2, window_bounds = array<i64: 1, 96>}, {transform_indices = @transform_3, window_bounds = array<i64: 16, 96>}]} {
    %c0_i32 = arith.constant 0 : i32
    %0 = arith.cmpi eq, %arg2, %c0_i32 : i32
    %1 = arith.extui %0 : i1 to i32
    %c0_i32_0 = arith.constant 0 : i32
    %2 = arith.cmpi ne, %1, %c0_i32_0 : i32
    scf.if %2 {
      %cst_10 = arith.constant 0.000000e+00 : f32
      %13 = vector.broadcast %cst_10 : f32 to vector<16x96xf32>
      %c0_11 = arith.constant 0 : index
      %c0_12 = arith.constant 0 : index
      %14 = vector.load %arg7[%c0_11, %c0_12] : memref<16x96xf32, #tpu.memory_space<vmem>>, vector<16x96xf32>
      tpu.vector_store %arg7[%c0_11, %c0_12], %13 {strides = array<i32>} : memref<16x96xf32, #tpu.memory_space<vmem>>, vector<16x96xf32>,
    } else {
    }
    %c0 = arith.constant 0 : index
    %c0_1 = arith.constant 0 : index
    %3 = vector.load %arg7[%c0, %c0_1] : memref<16x96xf32, #tpu.memory_space<vmem>>, vector<16x96xf32>
    %c0_2 = arith.constant 0 : index
    %c0_3 = arith.constant 0 : index
    %4 = vector.load %arg3[%c0_2, %c0_3] : memref<16x32xf32, #tpu.memory_space<vmem>>, vector<16x32xf32>
    %5 = arith.truncf %4 : vector<16x32xf32> to vector<16x32xbf16>
    %c0_4 = arith.constant 0 : index
    %c0_5 = arith.constant 0 : index
    %6 = vector.load %arg4[%c0_4, %c0_5] : memref<32x96xbf16, #tpu.memory_space<vmem>>, vector<32x96xbf16>
    %cst = arith.constant dense<0.000000e+00> : vector<16x96xf32>
    %7 = tpu.matmul %5, %6, %cst {dimension_numbers = #tpu.dot_dimension_numbers<[1], [0], [0], [1], [0, 0, 1, 1], [], []>} : vector<16x32xbf16>, vector<32x96xbf16>, vector<16x96xf32> -> vector<16x96xf32>
    %8 = arith.addf %3, %7 : vector<16x96xf32>
    %c0_6 = arith.constant 0 : index
    %c0_7 = arith.constant 0 : index
    %9 = vector.load %arg7[%c0_6, %c0_7] : memref<16x96xf32, #tpu.memory_space<vmem>>, vector<16x96xf32>
    tpu.vector_store %arg7[%c0_6, %c0_7], %8 {strides = array<i32>} : memref<16x96xf32, #tpu.memory_space<vmem>>, vector<16x96xf32>,
    %c0_i32_8 = arith.constant 0 : i32
    %10 = arith.cmpi eq, %arg2, %c0_i32_8 : i32
    %11 = arith.extui %10 : i1 to i32
    %c0_i32_9 = arith.constant 0 : i32
    %12 = arith.cmpi ne, %11, %c0_i32_9 : i32
    scf.if %12 {
      %c0_10 = arith.constant 0 : index
      %c0_11 = arith.constant 0 : index
      %13 = vector.load %arg7[%c0_10, %c0_11] : memref<16x96xf32, #tpu.memory_space<vmem>>, vector<16x96xf32>
      %c0_12 = arith.constant 0 : index
      %c0_13 = arith.constant 0 : index
      %14 = vector.load %arg5[%c0_12, %c0_13] : memref<1x96xf32, #tpu.memory_space<vmem>>, vector<1x96xf32>
      %15 = vector.broadcast %14 : vector<1x96xf32> to vector<16x96xf32>
      %16 = arith.addf %13, %15 : vector<16x96xf32>
      %c0_14 = arith.constant 0 : index
      %c0_15 = arith.constant 0 : index
      %17 = vector.load %arg6[%c0_14, %c0_15] : memref<16x96xf32, #tpu.memory_space<vmem>>, vector<16x96xf32>
      tpu.vector_store %arg6[%c0_14, %c0_15], %16 {strides = array<i32>} : memref<16x96xf32, #tpu.memory_space<vmem>>, vector<16x96xf32>,
    } else {
    }
    return
  }
  func.func @transform_0(%arg0: i32, %arg1: i32, %arg2: i32) -> (i32, i32) {
    %c0_i32 = arith.constant 0 : i32
    return %arg0, %arg2 : i32, i32
  }
  func.func @transform_1(%arg0: i32, %arg1: i32, %arg2: i32) -> (i32, i32) {
    %c0_i32 = arith.constant 0 : i32
    return %arg2, %arg1 : i32, i32
  }
  func.func @transform_2(%arg0: i32, %arg1: i32, %arg2: i32) -> (i32, i32) {
    %c0_i32 = arith.constant 0 : i32
    %c0_i32_0 = arith.constant 0 : i32
    return %c0_i32, %arg1 : i32, i32
  }
  func.func @transform_3(%arg0: i32, %arg1: i32, %arg2: i32) -> (i32, i32) {
    %c0_i32 = arith.constant 0 : i32
    return %arg0, %arg1 : i32, i32
  }
}

module attributes {stable_mosaic.version = 11 : i64} {
  func.func @_flash_attn_kernel(%arg0: i32, %arg1: i32, %arg2: i32, %arg3: memref<1x8x8xf32, #tpu.memory_space<vmem>>, %arg4: memref<1x8x8xf32, #tpu.memory_space<vmem>>, %arg5: memref<1x8x8xf32, #tpu.memory_space<vmem>>, %arg6: memref<1x8x8xf32, #tpu.memory_space<vmem>>, %arg7: memref<1x8x1xf32, #tpu.memory_space<vmem>>, %arg8: memref<1x8x1xf32, #tpu.memory_space<vmem>>, %arg9: memref<1x8x8xf32, #tpu.memory_space<vmem>>) attributes {dimension_semantics = [#tpu.dimension_semantics<parallel>, #tpu.dimension_semantics<parallel>, #tpu.dimension_semantics<arbitrary>], iteration_bounds = array<i64: 8, 1, 1>, scalar_prefetch = 0 : i64, scratch_operands = 3 : i64, tpu.core_type = #tpu.core_type<tc>, window_params = [{transform_indices = @transform_0, window_bounds = array<i64: 1, 8, 8>}, {transform_indices = @transform_1, window_bounds = array<i64: 1, 8, 8>}, {transform_indices = @transform_2, window_bounds = array<i64: 1, 8, 8>}, {transform_indices = @transform_3, window_bounds = array<i64: 1, 8, 8>}]} {
    %c0_i32 = arith.constant 0 : i32
    %0 = arith.cmpi eq, %arg2, %c0_i32 : i32
    %1 = arith.extui %0 : i1 to i32
    %c0_i32_0 = arith.constant 0 : i32
    %2 = arith.cmpi ne, %1, %c0_i32_0 : i32
    scf.if %2 {
      %cst_36 = arith.constant 0xFF800000 : f32
      %64 = vector.broadcast %cst_36 : f32 to vector<1x8x1xf32>
      %c0_37 = arith.constant 0 : index
      %c0_38 = arith.constant 0 : index
      %c0_39 = arith.constant 0 : index
      %65 = vector.load %arg7[%c0_37, %c0_38, %c0_39] : memref<1x8x1xf32, #tpu.memory_space<vmem>>, vector<1x8x1xf32>
      tpu.vector_store %arg7[%c0_37, %c0_38, %c0_39], %64 {strides = array<i32>} : memref<1x8x1xf32, #tpu.memory_space<vmem>>, vector<1x8x1xf32>,
      %cst_40 = arith.constant 0.000000e+00 : f32
      %66 = vector.broadcast %cst_40 : f32 to vector<1x8x1xf32>
      %c0_41 = arith.constant 0 : index
      %c0_42 = arith.constant 0 : index
      %c0_43 = arith.constant 0 : index
      %67 = vector.load %arg8[%c0_41, %c0_42, %c0_43] : memref<1x8x1xf32, #tpu.memory_space<vmem>>, vector<1x8x1xf32>
      tpu.vector_store %arg8[%c0_41, %c0_42, %c0_43], %66 {strides = array<i32>} : memref<1x8x1xf32, #tpu.memory_space<vmem>>, vector<1x8x1xf32>,
      %cst_44 = arith.constant 0.000000e+00 : f32
      %68 = vector.broadcast %cst_44 : f32 to vector<1x8x8xf32>
      %c0_45 = arith.constant 0 : index
      %c0_46 = arith.constant 0 : index
      %c0_47 = arith.constant 0 : index
      %69 = vector.load %arg9[%c0_45, %c0_46, %c0_47] : memref<1x8x8xf32, #tpu.memory_space<vmem>>, vector<1x8x8xf32>
      tpu.vector_store %arg9[%c0_45, %c0_46, %c0_47], %68 {strides = array<i32>} : memref<1x8x8xf32, #tpu.memory_space<vmem>>, vector<1x8x8xf32>,
    } else {
    }
    %c8_i32 = arith.constant 8 : i32
    %3 = arith.muli %arg1, %c8_i32 : i32
    %4 = tpu.iota {dimensions = array<i32: 0>} : vector<8x8xi32>
    %5 = vector.broadcast %3 : i32 to vector<8x8xi32>
    %6 = arith.addi %5, %4 : vector<8x8xi32>
    %c8_i32_1 = arith.constant 8 : i32
    %7 = arith.muli %arg2, %c8_i32_1 : i32
    %8 = tpu.iota {dimensions = array<i32: 1>} : vector<8x8xi32>
    %9 = vector.broadcast %7 : i32 to vector<8x8xi32>
    %10 = arith.addi %9, %8 : vector<8x8xi32>
    %11 = arith.cmpi sge, %6, %10 : vector<8x8xi32>
    %cst = arith.constant 0.000000e+00 : f32
    %cst_2 = arith.constant -1.000000e+09 : f32
    %12 = vector.broadcast %cst : f32 to vector<8x8xf32>
    %13 = vector.broadcast %cst_2 : f32 to vector<8x8xf32>
    %14 = arith.select %11, %12, %13 : vector<8x8xi1>, vector<8x8xf32>
    %c0 = arith.constant 0 : index
    %c0_3 = arith.constant 0 : index
    %c0_4 = arith.constant 0 : index
    %15 = vector.load %arg3[%c0, %c0_3, %c0_4] : memref<1x8x8xf32, #tpu.memory_space<vmem>>, vector<1x8x8xf32>
    %16 = vector.shape_cast %15 : vector<1x8x8xf32> to vector<8x8xf32>
    %c0_5 = arith.constant 0 : index
    %c0_6 = arith.constant 0 : index
    %c0_7 = arith.constant 0 : index
    %17 = vector.load %arg4[%c0_5, %c0_6, %c0_7] : memref<1x8x8xf32, #tpu.memory_space<vmem>>, vector<1x8x8xf32>
    %18 = vector.shape_cast %17 : vector<1x8x8xf32> to vector<8x8xf32>
    %c0_8 = arith.constant 0 : index
    %c0_9 = arith.constant 0 : index
    %c0_10 = arith.constant 0 : index
    %19 = vector.load %arg5[%c0_8, %c0_9, %c0_10] : memref<1x8x8xf32, #tpu.memory_space<vmem>>, vector<1x8x8xf32>
    %20 = vector.shape_cast %19 : vector<1x8x8xf32> to vector<8x8xf32>
    %cst_11 = arith.constant 0.353553385 : f32
    %21 = vector.broadcast %cst_11 : f32 to vector<8x8xf32>
    %22 = arith.mulf %16, %21 : vector<8x8xf32>
    %23 = arith.truncf %22 : vector<8x8xf32> to vector<8x8xbf16>
    %24 = arith.truncf %18 : vector<8x8xf32> to vector<8x8xbf16>
    %25 = tpu.transpose %24, [1, 0] : vector<8x8xbf16> -> vector<8x8xbf16>
    %cst_12 = arith.constant dense<0.000000e+00> : vector<8x8xf32>
    %26 = tpu.matmul %23, %25, %cst_12 {dimension_numbers = #tpu.dot_dimension_numbers<[1], [0], [0], [1], [0, 0, 1, 1], [], []>} : vector<8x8xbf16>, vector<8x8xbf16>, vector<8x8xf32> -> vector<8x8xf32>
    %27 = arith.addf %26, %14 : vector<8x8xf32>
    %c0_13 = arith.constant 0 : index
    %c0_14 = arith.constant 0 : index
    %c0_15 = arith.constant 0 : index
    %28 = vector.load %arg7[%c0_13, %c0_14, %c0_15] : memref<1x8x1xf32, #tpu.memory_space<vmem>>, vector<1x8x1xf32>
    %29 = vector.shape_cast %28 : vector<1x8x1xf32> to vector<8x1xf32>
    %cst_16 = arith.constant dense<0xFF800000> : vector<8xf32>
    %30 = vector.multi_reduction <maximumf>, %27, %cst_16 [1] : vector<8x8xf32> to vector<8xf32>
    %31 = vector.shape_cast %30 : vector<8xf32> to vector<8x1xf32>
    %32 = arith.maximumf %29, %31 : vector<8x1xf32>
    %33 = arith.subf %29, %32 : vector<8x1xf32>
    %34 = math.exp %33 : vector<8x1xf32>
    %35 = vector.broadcast %32 : vector<8x1xf32> to vector<8x8xf32>
    %36 = arith.subf %27, %35 : vector<8x8xf32>
    %37 = math.exp %36 : vector<8x8xf32>
    %c0_17 = arith.constant 0 : index
    %c0_18 = arith.constant 0 : index
    %c0_19 = arith.constant 0 : index
    %38 = vector.load %arg8[%c0_17, %c0_18, %c0_19] : memref<1x8x1xf32, #tpu.memory_space<vmem>>, vector<1x8x1xf32>
    %39 = vector.shape_cast %38 : vector<1x8x1xf32> to vector<8x1xf32>
    %40 = arith.mulf %34, %39 : vector<8x1xf32>
    %cst_20 = arith.constant dense<0.000000e+00> : vector<8xf32>
    %41 = vector.multi_reduction <add>, %37, %cst_20 [1] : vector<8x8xf32> to vector<8xf32>
    %42 = vector.shape_cast %41 : vector<8xf32> to vector<8x1xf32>
    %43 = arith.addf %40, %42 : vector<8x1xf32>
    %c0_21 = arith.constant 0 : index
    %c0_22 = arith.constant 0 : index
    %c0_23 = arith.constant 0 : index
    %44 = vector.load %arg8[%c0_21, %c0_22, %c0_23] : memref<1x8x1xf32, #tpu.memory_space<vmem>>, vector<1x8x1xf32>
    %45 = vector.shape_cast %44 : vector<1x8x1xf32> to vector<8x1xf32>
    %46 = vector.shape_cast %43 : vector<8x1xf32> to vector<1x8x1xf32>
    tpu.vector_store %arg8[%c0_21, %c0_22, %c0_23], %46 {strides = array<i32>} : memref<1x8x1xf32, #tpu.memory_space<vmem>>, vector<1x8x1xf32>,
    %c0_24 = arith.constant 0 : index
    %c0_25 = arith.constant 0 : index
    %c0_26 = arith.constant 0 : index
    %47 = vector.load %arg9[%c0_24, %c0_25, %c0_26] : memref<1x8x8xf32, #tpu.memory_space<vmem>>, vector<1x8x8xf32>
    %48 = vector.shape_cast %47 : vector<1x8x8xf32> to vector<8x8xf32>
    %49 = vector.broadcast %34 : vector<8x1xf32> to vector<8x8xf32>
    %50 = arith.mulf %49, %48 : vector<8x8xf32>
    %51 = arith.truncf %37 : vector<8x8xf32> to vector<8x8xbf16>
    %52 = arith.truncf %20 : vector<8x8xf32> to vector<8x8xbf16>
    %cst_27 = arith.constant dense<0.000000e+00> : vector<8x8xf32>
    %53 = tpu.matmul %51, %52, %cst_27 {dimension_numbers = #tpu.dot_dimension_numbers<[1], [0], [0], [1], [0, 0, 1, 1], [], []>} : vector<8x8xbf16>, vector<8x8xbf16>, vector<8x8xf32> -> vector<8x8xf32>
    %54 = arith.addf %50, %53 : vector<8x8xf32>
    %c0_28 = arith.constant 0 : index
    %c0_29 = arith.constant 0 : index
    %c0_30 = arith.constant 0 : index
    %55 = vector.load %arg9[%c0_28, %c0_29, %c0_30] : memref<1x8x8xf32, #tpu.memory_space<vmem>>, vector<1x8x8xf32>
    %56 = vector.shape_cast %55 : vector<1x8x8xf32> to vector<8x8xf32>
    %57 = vector.shape_cast %54 : vector<8x8xf32> to vector<1x8x8xf32>
    tpu.vector_store %arg9[%c0_28, %c0_29, %c0_30], %57 {strides = array<i32>} : memref<1x8x8xf32, #tpu.memory_space<vmem>>, vector<1x8x8xf32>,
    %c0_31 = arith.constant 0 : index
    %c0_32 = arith.constant 0 : index
    %c0_33 = arith.constant 0 : index
    %58 = vector.load %arg7[%c0_31, %c0_32, %c0_33] : memref<1x8x1xf32, #tpu.memory_space<vmem>>, vector<1x8x1xf32>
    %59 = vector.shape_cast %58 : vector<1x8x1xf32> to vector<8x1xf32>
    %60 = vector.shape_cast %32 : vector<8x1xf32> to vector<1x8x1xf32>
    tpu.vector_store %arg7[%c0_31, %c0_32, %c0_33], %60 {strides = array<i32>} : memref<1x8x1xf32, #tpu.memory_space<vmem>>, vector<1x8x1xf32>,
    %c0_i32_34 = arith.constant 0 : i32
    %61 = arith.cmpi eq, %arg2, %c0_i32_34 : i32
    %62 = arith.extui %61 : i1 to i32
    %c0_i32_35 = arith.constant 0 : i32
    %63 = arith.cmpi ne, %62, %c0_i32_35 : i32
    scf.if %63 {
      %c0_36 = arith.constant 0 : index
      %c0_37 = arith.constant 0 : index
      %c0_38 = arith.constant 0 : index
      %64 = vector.load %arg9[%c0_36, %c0_37, %c0_38] : memref<1x8x8xf32, #tpu.memory_space<vmem>>, vector<1x8x8xf32>
      %65 = vector.shape_cast %64 : vector<1x8x8xf32> to vector<8x8xf32>
      %c0_39 = arith.constant 0 : index
      %c0_40 = arith.constant 0 : index
      %c0_41 = arith.constant 0 : index
      %66 = vector.load %arg8[%c0_39, %c0_40, %c0_41] : memref<1x8x1xf32, #tpu.memory_space<vmem>>, vector<1x8x1xf32>
      %67 = vector.shape_cast %66 : vector<1x8x1xf32> to vector<8x1xf32>
      %68 = vector.broadcast %67 : vector<8x1xf32> to vector<8x8xf32>
      %69 = arith.divf %65, %68 : vector<8x8xf32>
      %c0_42 = arith.constant 0 : index
      %c0_43 = arith.constant 0 : index
      %c0_44 = arith.constant 0 : index
      %70 = vector.load %arg6[%c0_42, %c0_43, %c0_44] : memref<1x8x8xf32, #tpu.memory_space<vmem>>, vector<1x8x8xf32>
      %71 = vector.shape_cast %70 : vector<1x8x8xf32> to vector<8x8xf32>
      %72 = vector.shape_cast %69 : vector<8x8xf32> to vector<1x8x8xf32>
      tpu.vector_store %arg6[%c0_42, %c0_43, %c0_44], %72 {strides = array<i32>} : memref<1x8x8xf32, #tpu.memory_space<vmem>>, vector<1x8x8xf32>,
    } else {
    }
    return
  }
  func.func @transform_0(%arg0: i32, %arg1: i32, %arg2: i32) -> (i32, i32, i32) {
    %c0_i32 = arith.constant 0 : i32
    %c0_i32_0 = arith.constant 0 : i32
    return %arg0, %arg1, %c0_i32 : i32, i32, i32
  }
  func.func @transform_1(%arg0: i32, %arg1: i32, %arg2: i32) -> (i32, i32, i32) {
    %c0_i32 = arith.constant 0 : i32
    %c0_i32_0 = arith.constant 0 : i32
    return %arg0, %arg2, %c0_i32 : i32, i32, i32
  }
  func.func @transform_2(%arg0: i32, %arg1: i32, %arg2: i32) -> (i32, i32, i32) {
    %c0_i32 = arith.constant 0 : i32
    %c0_i32_0 = arith.constant 0 : i32
    return %arg0, %arg2, %c0_i32 : i32, i32, i32
  }
  func.func @transform_3(%arg0: i32, %arg1: i32, %arg2: i32) -> (i32, i32, i32) {
    %c0_i32 = arith.constant 0 : i32
    %c0_i32_0 = arith.constant 0 : i32
    return %arg0, %arg1, %c0_i32 : i32, i32, i32
  }
}

module attributes {stable_mosaic.version = 11 : i64} {
  func.func @_add_layernorm_kernel(%arg0: i32, %arg1: memref<16x32xf32, #tpu.memory_space<vmem>>, %arg2: memref<16x32xf32, #tpu.memory_space<vmem>>, %arg3: memref<1x32xf32, #tpu.memory_space<vmem>>, %arg4: memref<1x32xf32, #tpu.memory_space<vmem>>, %arg5: memref<16x32xf32, #tpu.memory_space<vmem>>) attributes {dimension_semantics = [#tpu.dimension_semantics<parallel>], iteration_bounds = array<i64: 1>, scalar_prefetch = 0 : i64, scratch_operands = 0 : i64, tpu.core_type = #tpu.core_type<tc>, window_params = [{transform_indices = @transform_0, window_bounds = array<i64: 16, 32>}, {transform_indices = @transform_1, window_bounds = array<i64: 16, 32>}, {pipeline_mode = #tpu.pipeline_mode<synchronous>, transform_indices = @transform_2, window_bounds = array<i64: 1, 32>}, {pipeline_mode = #tpu.pipeline_mode<synchronous>, transform_indices = @transform_3, window_bounds = array<i64: 1, 32>}, {transform_indices = @transform_4, window_bounds = array<i64: 16, 32>}]} {
    %c0 = arith.constant 0 : index
    %c0_0 = arith.constant 0 : index
    %0 = vector.load %arg1[%c0, %c0_0] : memref<16x32xf32, #tpu.memory_space<vmem>>, vector<16x32xf32>
    %c0_1 = arith.constant 0 : index
    %c0_2 = arith.constant 0 : index
    %1 = vector.load %arg2[%c0_1, %c0_2] : memref<16x32xf32, #tpu.memory_space<vmem>>, vector<16x32xf32>
    %2 = arith.addf %0, %1 : vector<16x32xf32>
    %cst = arith.constant dense<0.000000e+00> : vector<16xf32>
    %3 = vector.multi_reduction <add>, %2, %cst [1] : vector<16x32xf32> to vector<16xf32>
    %4 = vector.shape_cast %3 : vector<16xf32> to vector<16x1xf32>
    %cst_3 = arith.constant 3.200000e+01 : f32
    %5 = vector.broadcast %cst_3 : f32 to vector<16x1xf32>
    %6 = arith.divf %4, %5 : vector<16x1xf32>
    %7 = vector.broadcast %6 : vector<16x1xf32> to vector<16x32xf32>
    %8 = arith.subf %2, %7 : vector<16x32xf32>
    %9 = arith.mulf %8, %8 : vector<16x32xf32>
    %cst_4 = arith.constant dense<0.000000e+00> : vector<16xf32>
    %10 = vector.multi_reduction <add>, %9, %cst_4 [1] : vector<16x32xf32> to vector<16xf32>
    %11 = vector.shape_cast %10 : vector<16xf32> to vector<16x1xf32>
    %cst_5 = arith.constant 3.200000e+01 : f32
    %12 = vector.broadcast %cst_5 : f32 to vector<16x1xf32>
    %13 = arith.divf %11, %12 : vector<16x1xf32>
    %14 = vector.broadcast %6 : vector<16x1xf32> to vector<16x32xf32>
    %15 = arith.subf %2, %14 : vector<16x32xf32>
    %cst_6 = arith.constant 9.99999974E-6 : f32
    %16 = vector.broadcast %cst_6 : f32 to vector<16x1xf32>
    %17 = arith.addf %13, %16 : vector<16x1xf32>
    %18 = math.rsqrt %17 : vector<16x1xf32>
    %19 = vector.broadcast %18 : vector<16x1xf32> to vector<16x32xf32>
    %20 = arith.mulf %15, %19 : vector<16x32xf32>
    %c0_7 = arith.constant 0 : index
    %c0_8 = arith.constant 0 : index
    %21 = vector.load %arg3[%c0_7, %c0_8] : memref<1x32xf32, #tpu.memory_space<vmem>>, vector<1x32xf32>
    %22 = vector.broadcast %21 : vector<1x32xf32> to vector<16x32xf32>
    %23 = arith.mulf %20, %22 : vector<16x32xf32>
    %c0_9 = arith.constant 0 : index
    %c0_10 = arith.constant 0 : index
    %24 = vector.load %arg4[%c0_9, %c0_10] : memref<1x32xf32, #tpu.memory_space<vmem>>, vector<1x32xf32>
    %25 = vector.broadcast %24 : vector<1x32xf32> to vector<16x32xf32>
    %26 = arith.addf %23, %25 : vector<16x32xf32>
    %c0_11 = arith.constant 0 : index
    %c0_12 = arith.constant 0 : index
    %27 = vector.load %arg5[%c0_11, %c0_12] : memref<16x32xf32, #tpu.memory_space<vmem>>, vector<16x32xf32>
    tpu.vector_store %arg5[%c0_11, %c0_12], %26 {strides = array<i32>} : memref<16x32xf32, #tpu.memory_space<vmem>>, vector<16x32xf32>,
    return
  }
  func.func @transform_0(%arg0: i32) -> (i32, i32) {
    %c0_i32 = arith.constant 0 : i32
    %c0_i32_0 = arith.constant 0 : i32
    return %arg0, %c0_i32 : i32, i32
  }
  func.func @transform_1(%arg0: i32) -> (i32, i32) {
    %c0_i32 = arith.constant 0 : i32
    %c0_i32_0 = arith.constant 0 : i32
    return %arg0, %c0_i32 : i32, i32
  }
  func.func @transform_2(%arg0: i32) -> (i32, i32) {
    %c0_i32 = arith.constant 0 : i32
    %c0_i32_0 = arith.constant 0 : i32
    %c0_i32_1 = arith.constant 0 : i32
    return %c0_i32, %c0_i32_0 : i32, i32
  }
  func.func @transform_3(%arg0: i32) -> (i32, i32) {
    %c0_i32 = arith.constant 0 : i32
    %c0_i32_0 = arith.constant 0 : i32
    %c0_i32_1 = arith.constant 0 : i32
    return %c0_i32, %c0_i32_0 : i32, i32
  }
  func.func @transform_4(%arg0: i32) -> (i32, i32) {
    %c0_i32 = arith.constant 0 : i32
    %c0_i32_0 = arith.constant 0 : i32
    return %arg0, %c0_i32 : i32, i32
  }
}

module attributes {stable_mosaic.version = 11 : i64} {
  func.func @_linear_kernel(%arg0: i32, %arg1: i32, %arg2: i32, %arg3: memref<16x32xf32, #tpu.memory_space<vmem>>, %arg4: memref<32x32xbf16, #tpu.memory_space<vmem>>, %arg5: memref<1x32xf32, #tpu.memory_space<vmem>>, %arg6: memref<16x32xf32, #tpu.memory_space<vmem>>, %arg7: memref<16x32xf32, #tpu.memory_space<vmem>>) attributes {dimension_semantics = [#tpu.dimension_semantics<parallel>, #tpu.dimension_semantics<parallel>, #tpu.dimension_semantics<arbitrary>], iteration_bounds = array<i64: 1, 1, 1>, scalar_prefetch = 0 : i64, scratch_operands = 1 : i64, tpu.core_type = #tpu.core_type<tc>, window_params = [{transform_indices = @transform_0, window_bounds = array<i64: 16, 32>}, {transform_indices = @transform_1, window_bounds = array<i64: 32, 32>}, {transform_indices = @transform_2, window_bounds = array<i64: 1, 32>}, {transform_indices = @transform_3, window_bounds = array<i64: 16, 32>}]} {
    %c0_i32 = arith.constant 0 : i32
    %0 = arith.cmpi eq, %arg2, %c0_i32 : i32
    %1 = arith.extui %0 : i1 to i32
    %c0_i32_0 = arith.constant 0 : i32
    %2 = arith.cmpi ne, %1, %c0_i32_0 : i32
    scf.if %2 {
      %cst_10 = arith.constant 0.000000e+00 : f32
      %13 = vector.broadcast %cst_10 : f32 to vector<16x32xf32>
      %c0_11 = arith.constant 0 : index
      %c0_12 = arith.constant 0 : index
      %14 = vector.load %arg7[%c0_11, %c0_12] : memref<16x32xf32, #tpu.memory_space<vmem>>, vector<16x32xf32>
      tpu.vector_store %arg7[%c0_11, %c0_12], %13 {strides = array<i32>} : memref<16x32xf32, #tpu.memory_space<vmem>>, vector<16x32xf32>,
    } else {
    }
    %c0 = arith.constant 0 : index
    %c0_1 = arith.constant 0 : index
    %3 = vector.load %arg7[%c0, %c0_1] : memref<16x32xf32, #tpu.memory_space<vmem>>, vector<16x32xf32>
    %c0_2 = arith.constant 0 : index
    %c0_3 = arith.constant 0 : index
    %4 = vector.load %arg3[%c0_2, %c0_3] : memref<16x32xf32, #tpu.memory_space<vmem>>, vector<16x32xf32>
    %5 = arith.truncf %4 : vector<16x32xf32> to vector<16x32xbf16>
    %c0_4 = arith.constant 0 : index
    %c0_5 = arith.constant 0 : index
    %6 = vector.load %arg4[%c0_4, %c0_5] : memref<32x32xbf16, #tpu.memory_space<vmem>>, vector<32x32xbf16>
    %cst = arith.constant dense<0.000000e+00> : vector<16x32xf32>
    %7 = tpu.matmul %5, %6, %cst {dimension_numbers = #tpu.dot_dimension_numbers<[1], [0], [0], [1], [0, 0, 1, 1], [], []>} : vector<16x32xbf16>, vector<32x32xbf16>, vector<16x32xf32> -> vector<16x32xf32>
    %8 = arith.addf %3, %7 : vector<16x32xf32>
    %c0_6 = arith.constant 0 : index
    %c0_7 = arith.constant 0 : index
    %9 = vector.load %arg7[%c0_6, %c0_7] : memref<16x32xf32, #tpu.memory_space<vmem>>, vector<16x32xf32>
    tpu.vector_store %arg7[%c0_6, %c0_7], %8 {strides = array<i32>} : memref<16x32xf32, #tpu.memory_space<vmem>>, vector<16x32xf32>,
    %c0_i32_8 = arith.constant 0 : i32
    %10 = arith.cmpi eq, %arg2, %c0_i32_8 : i32
    %11 = arith.extui %10 : i1 to i32
    %c0_i32_9 = arith.constant 0 : i32
    %12 = arith.cmpi ne, %11, %c0_i32_9 : i32
    scf.if %12 {
      %c0_10 = arith.constant 0 : index
      %c0_11 = arith.constant 0 : index
      %13 = vector.load %arg7[%c0_10, %c0_11] : memref<16x32xf32, #tpu.memory_space<vmem>>, vector<16x32xf32>
      %c0_12 = arith.constant 0 : index
      %c0_13 = arith.constant 0 : index
      %14 = vector.load %arg5[%c0_12, %c0_13] : memref<1x32xf32, #tpu.memory_space<vmem>>, vector<1x32xf32>
      %15 = vector.broadcast %14 : vector<1x32xf32> to vector<16x32xf32>
      %16 = arith.addf %13, %15 : vector<16x32xf32>
      %c0_14 = arith.constant 0 : index
      %c0_15 = arith.constant 0 : index
      %17 = vector.load %arg6[%c0_14, %c0_15] : memref<16x32xf32, #tpu.memory_space<vmem>>, vector<16x32xf32>
      tpu.vector_store %arg6[%c0_14, %c0_15], %16 {strides = array<i32>} : memref<16x32xf32, #tpu.memory_space<vmem>>, vector<16x32xf32>,
    } else {
    }
    return
  }
  func.func @transform_0(%arg0: i32, %arg1: i32, %arg2: i32) -> (i32, i32) {
    %c0_i32 = arith.constant 0 : i32
    return %arg0, %arg2 : i32, i32
  }
  func.func @transform_1(%arg0: i32, %arg1: i32, %arg2: i32) -> (i32, i32) {
    %c0_i32 = arith.constant 0 : i32
    return %arg2, %arg1 : i32, i32
  }
  func.func @transform_2(%arg0: i32, %arg1: i32, %arg2: i32) -> (i32, i32) {
    %c0_i32 = arith.constant 0 : i32
    %c0_i32_0 = arith.constant 0 : i32
    return %c0_i32, %arg1 : i32, i32
  }
  func.func @transform_3(%arg0: i32, %arg1: i32, %arg2: i32) -> (i32, i32) {
    %c0_i32 = arith.constant 0 : i32
    return %arg0, %arg1 : i32, i32
  }
}

module attributes {stable_mosaic.version = 11 : i64} {
  func.func @_flash_attn_kernel(%arg0: i32, %arg1: i32, %arg2: i32, %arg3: memref<1x8x8xf32, #tpu.memory_space<vmem>>, %arg4: memref<1x8x8xf32, #tpu.memory_space<vmem>>, %arg5: memref<1x8x8xf32, #tpu.memory_space<vmem>>, %arg6: memref<8x8xf32, #tpu.memory_space<vmem>>, %arg7: memref<1x8x8xf32, #tpu.memory_space<vmem>>, %arg8: memref<1x8x1xf32, #tpu.memory_space<vmem>>, %arg9: memref<1x8x1xf32, #tpu.memory_space<vmem>>, %arg10: memref<1x8x8xf32, #tpu.memory_space<vmem>>) attributes {dimension_semantics = [#tpu.dimension_semantics<parallel>, #tpu.dimension_semantics<parallel>, #tpu.dimension_semantics<arbitrary>], iteration_bounds = array<i64: 8, 1, 1>, scalar_prefetch = 0 : i64, scratch_operands = 3 : i64, tpu.core_type = #tpu.core_type<tc>, window_params = [{transform_indices = @transform_0, window_bounds = array<i64: 1, 8, 8>}, {transform_indices = @transform_1, window_bounds = array<i64: 1, 8, 8>}, {transform_indices = @transform_2, window_bounds = array<i64: 1, 8, 8>}, {transform_indices = @transform_3, window_bounds = array<i64: 8, 8>}, {transform_indices = @transform_4, window_bounds = array<i64: 1, 8, 8>}]} {
    %c0_i32 = arith.constant 0 : i32
    %0 = arith.cmpi eq, %arg2, %c0_i32 : i32
    %1 = arith.extui %0 : i1 to i32
    %c0_i32_0 = arith.constant 0 : i32
    %2 = arith.cmpi ne, %1, %c0_i32_0 : i32
    scf.if %2 {
      %cst_35 = arith.constant 0xFF800000 : f32
      %53 = vector.broadcast %cst_35 : f32 to vector<1x8x1xf32>
      %c0_36 = arith.constant 0 : index
      %c0_37 = arith.constant 0 : index
      %c0_38 = arith.constant 0 : index
      %54 = vector.load %arg8[%c0_36, %c0_37, %c0_38] : memref<1x8x1xf32, #tpu.memory_space<vmem>>, vector<1x8x1xf32>
      tpu.vector_store %arg8[%c0_36, %c0_37, %c0_38], %53 {strides = array<i32>} : memref<1x8x1xf32, #tpu.memory_space<vmem>>, vector<1x8x1xf32>,
      %cst_39 = arith.constant 0.000000e+00 : f32
      %55 = vector.broadcast %cst_39 : f32 to vector<1x8x1xf32>
      %c0_40 = arith.constant 0 : index
      %c0_41 = arith.constant 0 : index
      %c0_42 = arith.constant 0 : index
      %56 = vector.load %arg9[%c0_40, %c0_41, %c0_42] : memref<1x8x1xf32, #tpu.memory_space<vmem>>, vector<1x8x1xf32>
      tpu.vector_store %arg9[%c0_40, %c0_41, %c0_42], %55 {strides = array<i32>} : memref<1x8x1xf32, #tpu.memory_space<vmem>>, vector<1x8x1xf32>,
      %cst_43 = arith.constant 0.000000e+00 : f32
      %57 = vector.broadcast %cst_43 : f32 to vector<1x8x8xf32>
      %c0_44 = arith.constant 0 : index
      %c0_45 = arith.constant 0 : index
      %c0_46 = arith.constant 0 : index
      %58 = vector.load %arg10[%c0_44, %c0_45, %c0_46] : memref<1x8x8xf32, #tpu.memory_space<vmem>>, vector<1x8x8xf32>
      tpu.vector_store %arg10[%c0_44, %c0_45, %c0_46], %57 {strides = array<i32>} : memref<1x8x8xf32, #tpu.memory_space<vmem>>, vector<1x8x8xf32>,
    } else {
    }
    %c0 = arith.constant 0 : index
    %c0_1 = arith.constant 0 : index
    %3 = vector.load %arg6[%c0, %c0_1] : memref<8x8xf32, #tpu.memory_space<vmem>>, vector<8x8xf32>
    %c0_2 = arith.constant 0 : index
    %c0_3 = arith.constant 0 : index
    %c0_4 = arith.constant 0 : index
    %4 = vector.load %arg3[%c0_2, %c0_3, %c0_4] : memref<1x8x8xf32, #tpu.memory_space<vmem>>, vector<1x8x8xf32>
    %5 = vector.shape_cast %4 : vector<1x8x8xf32> to vector<8x8xf32>
    %c0_5 = arith.constant 0 : index
    %c0_6 = arith.constant 0 : index
    %c0_7 = arith.constant 0 : index
    %6 = vector.load %arg4[%c0_5, %c0_6, %c0_7] : memref<1x8x8xf32, #tpu.memory_space<vmem>>, vector<1x8x8xf32>
    %7 = vector.shape_cast %6 : vector<1x8x8xf32> to vector<8x8xf32>
    %c0_8 = arith.constant 0 : index
    %c0_9 = arith.constant 0 : index
    %c0_10 = arith.constant 0 : index
    %8 = vector.load %arg5[%c0_8, %c0_9, %c0_10] : memref<1x8x8xf32, #tpu.memory_space<vmem>>, vector<1x8x8xf32>
    %9 = vector.shape_cast %8 : vector<1x8x8xf32> to vector<8x8xf32>
    %cst = arith.constant 0.353553385 : f32
    %10 = vector.broadcast %cst : f32 to vector<8x8xf32>
    %11 = arith.mulf %5, %10 : vector<8x8xf32>
    %12 = arith.truncf %11 : vector<8x8xf32> to vector<8x8xbf16>
    %13 = arith.truncf %7 : vector<8x8xf32> to vector<8x8xbf16>
    %14 = tpu.transpose %13, [1, 0] : vector<8x8xbf16> -> vector<8x8xbf16>
    %cst_11 = arith.constant dense<0.000000e+00> : vector<8x8xf32>
    %15 = tpu.matmul %12, %14, %cst_11 {dimension_numbers = #tpu.dot_dimension_numbers<[1], [0], [0], [1], [0, 0, 1, 1], [], []>} : vector<8x8xbf16>, vector<8x8xbf16>, vector<8x8xf32> -> vector<8x8xf32>
    %16 = arith.addf %15, %3 : vector<8x8xf32>
    %c0_12 = arith.constant 0 : index
    %c0_13 = arith.constant 0 : index
    %c0_14 = arith.constant 0 : index
    %17 = vector.load %arg8[%c0_12, %c0_13, %c0_14] : memref<1x8x1xf32, #tpu.memory_space<vmem>>, vector<1x8x1xf32>
    %18 = vector.shape_cast %17 : vector<1x8x1xf32> to vector<8x1xf32>
    %cst_15 = arith.constant dense<0xFF800000> : vector<8xf32>
    %19 = vector.multi_reduction <maximumf>, %16, %cst_15 [1] : vector<8x8xf32> to vector<8xf32>
    %20 = vector.shape_cast %19 : vector<8xf32> to vector<8x1xf32>
    %21 = arith.maximumf %18, %20 : vector<8x1xf32>
    %22 = arith.subf %18, %21 : vector<8x1xf32>
    %23 = math.exp %22 : vector<8x1xf32>
    %24 = vector.broadcast %21 : vector<8x1xf32> to vector<8x8xf32>
    %25 = arith.subf %16, %24 : vector<8x8xf32>
    %26 = math.exp %25 : vector<8x8xf32>
    %c0_16 = arith.constant 0 : index
    %c0_17 = arith.constant 0 : index
    %c0_18 = arith.constant 0 : index
    %27 = vector.load %arg9[%c0_16, %c0_17, %c0_18] : memref<1x8x1xf32, #tpu.memory_space<vmem>>, vector<1x8x1xf32>
    %28 = vector.shape_cast %27 : vector<1x8x1xf32> to vector<8x1xf32>
    %29 = arith.mulf %23, %28 : vector<8x1xf32>
    %cst_19 = arith.constant dense<0.000000e+00> : vector<8xf32>
    %30 = vector.multi_reduction <add>, %26, %cst_19 [1] : vector<8x8xf32> to vector<8xf32>
    %31 = vector.shape_cast %30 : vector<8xf32> to vector<8x1xf32>
    %32 = arith.addf %29, %31 : vector<8x1xf32>
    %c0_20 = arith.constant 0 : index
    %c0_21 = arith.constant 0 : index
    %c0_22 = arith.constant 0 : index
    %33 = vector.load %arg9[%c0_20, %c0_21, %c0_22] : memref<1x8x1xf32, #tpu.memory_space<vmem>>, vector<1x8x1xf32>
    %34 = vector.shape_cast %33 : vector<1x8x1xf32> to vector<8x1xf32>
    %35 = vector.shape_cast %32 : vector<8x1xf32> to vector<1x8x1xf32>
    tpu.vector_store %arg9[%c0_20, %c0_21, %c0_22], %35 {strides = array<i32>} : memref<1x8x1xf32, #tpu.memory_space<vmem>>, vector<1x8x1xf32>,
    %c0_23 = arith.constant 0 : index
    %c0_24 = arith.constant 0 : index
    %c0_25 = arith.constant 0 : index
    %36 = vector.load %arg10[%c0_23, %c0_24, %c0_25] : memref<1x8x8xf32, #tpu.memory_space<vmem>>, vector<1x8x8xf32>
    %37 = vector.shape_cast %36 : vector<1x8x8xf32> to vector<8x8xf32>
    %38 = vector.broadcast %23 : vector<8x1xf32> to vector<8x8xf32>
    %39 = arith.mulf %38, %37 : vector<8x8xf32>
    %40 = arith.truncf %26 : vector<8x8xf32> to vector<8x8xbf16>
    %41 = arith.truncf %9 : vector<8x8xf32> to vector<8x8xbf16>
    %cst_26 = arith.constant dense<0.000000e+00> : vector<8x8xf32>
    %42 = tpu.matmul %40, %41, %cst_26 {dimension_numbers = #tpu.dot_dimension_numbers<[1], [0], [0], [1], [0, 0, 1, 1], [], []>} : vector<8x8xbf16>, vector<8x8xbf16>, vector<8x8xf32> -> vector<8x8xf32>
    %43 = arith.addf %39, %42 : vector<8x8xf32>
    %c0_27 = arith.constant 0 : index
    %c0_28 = arith.constant 0 : index
    %c0_29 = arith.constant 0 : index
    %44 = vector.load %arg10[%c0_27, %c0_28, %c0_29] : memref<1x8x8xf32, #tpu.memory_space<vmem>>, vector<1x8x8xf32>
    %45 = vector.shape_cast %44 : vector<1x8x8xf32> to vector<8x8xf32>
    %46 = vector.shape_cast %43 : vector<8x8xf32> to vector<1x8x8xf32>
    tpu.vector_store %arg10[%c0_27, %c0_28, %c0_29], %46 {strides = array<i32>} : memref<1x8x8xf32, #tpu.memory_space<vmem>>, vector<1x8x8xf32>,
    %c0_30 = arith.constant 0 : index
    %c0_31 = arith.constant 0 : index
    %c0_32 = arith.constant 0 : index
    %47 = vector.load %arg8[%c0_30, %c0_31, %c0_32] : memref<1x8x1xf32, #tpu.memory_space<vmem>>, vector<1x8x1xf32>
    %48 = vector.shape_cast %47 : vector<1x8x1xf32> to vector<8x1xf32>
    %49 = vector.shape_cast %21 : vector<8x1xf32> to vector<1x8x1xf32>
    tpu.vector_store %arg8[%c0_30, %c0_31, %c0_32], %49 {strides = array<i32>} : memref<1x8x1xf32, #tpu.memory_space<vmem>>, vector<1x8x1xf32>,
    %c0_i32_33 = arith.constant 0 : i32
    %50 = arith.cmpi eq, %arg2, %c0_i32_33 : i32
    %51 = arith.extui %50 : i1 to i32
    %c0_i32_34 = arith.constant 0 : i32
    %52 = arith.cmpi ne, %51, %c0_i32_34 : i32
    scf.if %52 {
      %c0_35 = arith.constant 0 : index
      %c0_36 = arith.constant 0 : index
      %c0_37 = arith.constant 0 : index
      %53 = vector.load %arg10[%c0_35, %c0_36, %c0_37] : memref<1x8x8xf32, #tpu.memory_space<vmem>>, vector<1x8x8xf32>
      %54 = vector.shape_cast %53 : vector<1x8x8xf32> to vector<8x8xf32>
      %c0_38 = arith.constant 0 : index
      %c0_39 = arith.constant 0 : index
      %c0_40 = arith.constant 0 : index
      %55 = vector.load %arg9[%c0_38, %c0_39, %c0_40] : memref<1x8x1xf32, #tpu.memory_space<vmem>>, vector<1x8x1xf32>
      %56 = vector.shape_cast %55 : vector<1x8x1xf32> to vector<8x1xf32>
      %57 = vector.broadcast %56 : vector<8x1xf32> to vector<8x8xf32>
      %58 = arith.divf %54, %57 : vector<8x8xf32>
      %c0_41 = arith.constant 0 : index
      %c0_42 = arith.constant 0 : index
      %c0_43 = arith.constant 0 : index
      %59 = vector.load %arg7[%c0_41, %c0_42, %c0_43] : memref<1x8x8xf32, #tpu.memory_space<vmem>>, vector<1x8x8xf32>
      %60 = vector.shape_cast %59 : vector<1x8x8xf32> to vector<8x8xf32>
      %61 = vector.shape_cast %58 : vector<8x8xf32> to vector<1x8x8xf32>
      tpu.vector_store %arg7[%c0_41, %c0_42, %c0_43], %61 {strides = array<i32>} : memref<1x8x8xf32, #tpu.memory_space<vmem>>, vector<1x8x8xf32>,
    } else {
    }
    return
  }
  func.func @transform_0(%arg0: i32, %arg1: i32, %arg2: i32) -> (i32, i32, i32) {
    %c0_i32 = arith.constant 0 : i32
    %c0_i32_0 = arith.constant 0 : i32
    return %arg0, %arg1, %c0_i32 : i32, i32, i32
  }
  func.func @transform_1(%arg0: i32, %arg1: i32, %arg2: i32) -> (i32, i32, i32) {
    %c0_i32 = arith.constant 0 : i32
    %c0_i32_0 = arith.constant 0 : i32
    return %arg0, %arg2, %c0_i32 : i32, i32, i32
  }
  func.func @transform_2(%arg0: i32, %arg1: i32, %arg2: i32) -> (i32, i32, i32) {
    %c0_i32 = arith.constant 0 : i32
    %c0_i32_0 = arith.constant 0 : i32
    return %arg0, %arg2, %c0_i32 : i32, i32, i32
  }
  func.func @transform_3(%arg0: i32, %arg1: i32, %arg2: i32) -> (i32, i32) {
    %c0_i32 = arith.constant 0 : i32
    return %arg1, %arg2 : i32, i32
  }
  func.func @transform_4(%arg0: i32, %arg1: i32, %arg2: i32) -> (i32, i32, i32) {
    %c0_i32 = arith.constant 0 : i32
    %c0_i32_0 = arith.constant 0 : i32
    return %arg0, %arg1, %c0_i32 : i32, i32, i32
  }
}

module attributes {stable_mosaic.version = 11 : i64} {
  func.func @_ffn_kernel(%arg0: i32, %arg1: i32, %arg2: memref<16x32xf32, #tpu.memory_space<vmem>>, %arg3: memref<32x64xbf16, #tpu.memory_space<vmem>>, %arg4: memref<1x64xf32, #tpu.memory_space<vmem>>, %arg5: memref<64x32xbf16, #tpu.memory_space<vmem>>, %arg6: memref<1x32xf32, #tpu.memory_space<vmem>>, %arg7: memref<16x32xf32, #tpu.memory_space<vmem>>, %arg8: memref<16x32xf32, #tpu.memory_space<vmem>>) attributes {dimension_semantics = [#tpu.dimension_semantics<parallel>, #tpu.dimension_semantics<arbitrary>], iteration_bounds = array<i64: 1, 1>, scalar_prefetch = 0 : i64, scratch_operands = 1 : i64, tpu.core_type = #tpu.core_type<tc>, window_params = [{transform_indices = @transform_0, window_bounds = array<i64: 16, 32>}, {transform_indices = @transform_1, window_bounds = array<i64: 32, 64>}, {transform_indices = @transform_2, window_bounds = array<i64: 1, 64>}, {transform_indices = @transform_3, window_bounds = array<i64: 64, 32>}, {pipeline_mode = #tpu.pipeline_mode<synchronous>, transform_indices = @transform_4, window_bounds = array<i64: 1, 32>}, {transform_indices = @transform_5, window_bounds = array<i64: 16, 32>}]} {
    %c0_i32 = arith.constant 0 : i32
    %0 = arith.cmpi eq, %arg1, %c0_i32 : i32
    %1 = arith.extui %0 : i1 to i32
    %c0_i32_0 = arith.constant 0 : i32
    %2 = arith.cmpi ne, %1, %c0_i32_0 : i32
    scf.if %2 {
      %cst_16 = arith.constant 0.000000e+00 : f32
      %21 = vector.broadcast %cst_16 : f32 to vector<16x32xf32>
      %c0_17 = arith.constant 0 : index
      %c0_18 = arith.constant 0 : index
      %22 = vector.load %arg8[%c0_17, %c0_18] : memref<16x32xf32, #tpu.memory_space<vmem>>, vector<16x32xf32>
      tpu.vector_store %arg8[%c0_17, %c0_18], %21 {strides = array<i32>} : memref<16x32xf32, #tpu.memory_space<vmem>>, vector<16x32xf32>,
    } else {
    }
    %c0 = arith.constant 0 : index
    %c0_1 = arith.constant 0 : index
    %3 = vector.load %arg2[%c0, %c0_1] : memref<16x32xf32, #tpu.memory_space<vmem>>, vector<16x32xf32>
    %4 = arith.truncf %3 : vector<16x32xf32> to vector<16x32xbf16>
    %c0_2 = arith.constant 0 : index
    %c0_3 = arith.constant 0 : index
    %5 = vector.load %arg3[%c0_2, %c0_3] : memref<32x64xbf16, #tpu.memory_space<vmem>>, vector<32x64xbf16>
    %cst = arith.constant dense<0.000000e+00> : vector<16x64xf32>
    %6 = tpu.matmul %4, %5, %cst {dimension_numbers = #tpu.dot_dimension_numbers<[1], [0], [0], [1], [0, 0, 1, 1], [], []>} : vector<16x32xbf16>, vector<32x64xbf16>, vector<16x64xf32> -> vector<16x64xf32>
    %c0_4 = arith.constant 0 : index
    %c0_5 = arith.constant 0 : index
    %7 = vector.load %arg4[%c0_4, %c0_5] : memref<1x64xf32, #tpu.memory_space<vmem>>, vector<1x64xf32>
    %8 = vector.broadcast %7 : vector<1x64xf32> to vector<16x64xf32>
    %9 = arith.addf %6, %8 : vector<16x64xf32>
    %cst_6 = arith.constant 0.000000e+00 : f32
    %10 = vector.broadcast %cst_6 : f32 to vector<16x64xf32>
    %11 = arith.maximumf %9, %10 : vector<16x64xf32>
    %c0_7 = arith.constant 0 : index
    %c0_8 = arith.constant 0 : index
    %12 = vector.load %arg8[%c0_7, %c0_8] : memref<16x32xf32, #tpu.memory_space<vmem>>, vector<16x32xf32>
    %13 = arith.truncf %11 : vector<16x64xf32> to vector<16x64xbf16>
    %c0_9 = arith.constant 0 : index
    %c0_10 = arith.constant 0 : index
    %14 = vector.load %arg5[%c0_9, %c0_10] : memref<64x32xbf16, #tpu.memory_space<vmem>>, vector<64x32xbf16>
    %cst_11 = arith.constant dense<0.000000e+00> : vector<16x32xf32>
    %15 = tpu.matmul %13, %14, %cst_11 {dimension_numbers = #tpu.dot_dimension_numbers<[1], [0], [0], [1], [0, 0, 1, 1], [], []>} : vector<16x64xbf16>, vector<64x32xbf16>, vector<16x32xf32> -> vector<16x32xf32>
    %16 = arith.addf %12, %15 : vector<16x32xf32>
    %c0_12 = arith.constant 0 : index
    %c0_13 = arith.constant 0 : index
    %17 = vector.load %arg8[%c0_12, %c0_13] : memref<16x32xf32, #tpu.memory_space<vmem>>, vector<16x32xf32>
    tpu.vector_store %arg8[%c0_12, %c0_13], %16 {strides = array<i32>} : memref<16x32xf32, #tpu.memory_space<vmem>>, vector<16x32xf32>,
    %c0_i32_14 = arith.constant 0 : i32
    %18 = arith.cmpi eq, %arg1, %c0_i32_14 : i32
    %19 = arith.extui %18 : i1 to i32
    %c0_i32_15 = arith.constant 0 : i32
    %20 = arith.cmpi ne, %19, %c0_i32_15 : i32
    scf.if %20 {
      %c0_16 = arith.constant 0 : index
      %c0_17 = arith.constant 0 : index
      %21 = vector.load %arg8[%c0_16, %c0_17] : memref<16x32xf32, #tpu.memory_space<vmem>>, vector<16x32xf32>
      %c0_18 = arith.constant 0 : index
      %c0_19 = arith.constant 0 : index
      %22 = vector.load %arg6[%c0_18, %c0_19] : memref<1x32xf32, #tpu.memory_space<vmem>>, vector<1x32xf32>
      %23 = vector.broadcast %22 : vector<1x32xf32> to vector<16x32xf32>
      %24 = arith.addf %21, %23 : vector<16x32xf32>
      %c0_20 = arith.constant 0 : index
      %c0_21 = arith.constant 0 : index
      %25 = vector.load %arg7[%c0_20, %c0_21] : memref<16x32xf32, #tpu.memory_space<vmem>>, vector<16x32xf32>
      tpu.vector_store %arg7[%c0_20, %c0_21], %24 {strides = array<i32>} : memref<16x32xf32, #tpu.memory_space<vmem>>, vector<16x32xf32>,
    } else {
    }
    return
  }
  func.func @transform_0(%arg0: i32, %arg1: i32) -> (i32, i32) {
    %c0_i32 = arith.constant 0 : i32
    %c0_i32_0 = arith.constant 0 : i32
    return %arg0, %c0_i32 : i32, i32
  }
  func.func @transform_1(%arg0: i32, %arg1: i32) -> (i32, i32) {
    %c0_i32 = arith.constant 0 : i32
    %c0_i32_0 = arith.constant 0 : i32
    return %c0_i32, %arg1 : i32, i32
  }
  func.func @transform_2(%arg0: i32, %arg1: i32) -> (i32, i32) {
    %c0_i32 = arith.constant 0 : i32
    %c0_i32_0 = arith.constant 0 : i32
    return %c0_i32, %arg1 : i32, i32
  }
  func.func @transform_3(%arg0: i32, %arg1: i32) -> (i32, i32) {
    %c0_i32 = arith.constant 0 : i32
    %c0_i32_0 = arith.constant 0 : i32
    return %arg1, %c0_i32 : i32, i32
  }
  func.func @transform_4(%arg0: i32, %arg1: i32) -> (i32, i32) {
    %c0_i32 = arith.constant 0 : i32
    %c0_i32_0 = arith.constant 0 : i32
    %c0_i32_1 = arith.constant 0 : i32
    return %c0_i32, %c0_i32_0 : i32, i32
  }
  func.func @transform_5(%arg0: i32, %arg1: i32) -> (i32, i32) {
    %c0_i32 = arith.constant 0 : i32
    %c0_i32_0 = arith.constant 0 : i32
    return %arg0, %c0_i32 : i32, i32
  }
}

module attributes {stable_mosaic.version = 11 : i64} {
  func.func @_linear_kernel(%arg0: i32, %arg1: i32, %arg2: i32, %arg3: memref<16x32xf32, #tpu.memory_space<vmem>>, %arg4: memref<32x64xbf16, #tpu.memory_space<vmem>>, %arg5: memref<1x64xf32, #tpu.memory_space<vmem>>, %arg6: memref<16x64xf32, #tpu.memory_space<vmem>>, %arg7: memref<16x64xf32, #tpu.memory_space<vmem>>) attributes {dimension_semantics = [#tpu.dimension_semantics<parallel>, #tpu.dimension_semantics<parallel>, #tpu.dimension_semantics<arbitrary>], iteration_bounds = array<i64: 1, 1, 1>, scalar_prefetch = 0 : i64, scratch_operands = 1 : i64, tpu.core_type = #tpu.core_type<tc>, window_params = [{transform_indices = @transform_0, window_bounds = array<i64: 16, 32>}, {transform_indices = @transform_1, window_bounds = array<i64: 32, 64>}, {transform_indices = @transform_2, window_bounds = array<i64: 1, 64>}, {transform_indices = @transform_3, window_bounds = array<i64: 16, 64>}]} {
    %c0_i32 = arith.constant 0 : i32
    %0 = arith.cmpi eq, %arg2, %c0_i32 : i32
    %1 = arith.extui %0 : i1 to i32
    %c0_i32_0 = arith.constant 0 : i32
    %2 = arith.cmpi ne, %1, %c0_i32_0 : i32
    scf.if %2 {
      %cst_10 = arith.constant 0.000000e+00 : f32
      %13 = vector.broadcast %cst_10 : f32 to vector<16x64xf32>
      %c0_11 = arith.constant 0 : index
      %c0_12 = arith.constant 0 : index
      %14 = vector.load %arg7[%c0_11, %c0_12] : memref<16x64xf32, #tpu.memory_space<vmem>>, vector<16x64xf32>
      tpu.vector_store %arg7[%c0_11, %c0_12], %13 {strides = array<i32>} : memref<16x64xf32, #tpu.memory_space<vmem>>, vector<16x64xf32>,
    } else {
    }
    %c0 = arith.constant 0 : index
    %c0_1 = arith.constant 0 : index
    %3 = vector.load %arg7[%c0, %c0_1] : memref<16x64xf32, #tpu.memory_space<vmem>>, vector<16x64xf32>
    %c0_2 = arith.constant 0 : index
    %c0_3 = arith.constant 0 : index
    %4 = vector.load %arg3[%c0_2, %c0_3] : memref<16x32xf32, #tpu.memory_space<vmem>>, vector<16x32xf32>
    %5 = arith.truncf %4 : vector<16x32xf32> to vector<16x32xbf16>
    %c0_4 = arith.constant 0 : index
    %c0_5 = arith.constant 0 : index
    %6 = vector.load %arg4[%c0_4, %c0_5] : memref<32x64xbf16, #tpu.memory_space<vmem>>, vector<32x64xbf16>
    %cst = arith.constant dense<0.000000e+00> : vector<16x64xf32>
    %7 = tpu.matmul %5, %6, %cst {dimension_numbers = #tpu.dot_dimension_numbers<[1], [0], [0], [1], [0, 0, 1, 1], [], []>} : vector<16x32xbf16>, vector<32x64xbf16>, vector<16x64xf32> -> vector<16x64xf32>
    %8 = arith.addf %3, %7 : vector<16x64xf32>
    %c0_6 = arith.constant 0 : index
    %c0_7 = arith.constant 0 : index
    %9 = vector.load %arg7[%c0_6, %c0_7] : memref<16x64xf32, #tpu.memory_space<vmem>>, vector<16x64xf32>
    tpu.vector_store %arg7[%c0_6, %c0_7], %8 {strides = array<i32>} : memref<16x64xf32, #tpu.memory_space<vmem>>, vector<16x64xf32>,
    %c0_i32_8 = arith.constant 0 : i32
    %10 = arith.cmpi eq, %arg2, %c0_i32_8 : i32
    %11 = arith.extui %10 : i1 to i32
    %c0_i32_9 = arith.constant 0 : i32
    %12 = arith.cmpi ne, %11, %c0_i32_9 : i32
    scf.if %12 {
      %c0_10 = arith.constant 0 : index
      %c0_11 = arith.constant 0 : index
      %13 = vector.load %arg7[%c0_10, %c0_11] : memref<16x64xf32, #tpu.memory_space<vmem>>, vector<16x64xf32>
      %c0_12 = arith.constant 0 : index
      %c0_13 = arith.constant 0 : index
      %14 = vector.load %arg5[%c0_12, %c0_13] : memref<1x64xf32, #tpu.memory_space<vmem>>, vector<1x64xf32>
      %15 = vector.broadcast %14 : vector<1x64xf32> to vector<16x64xf32>
      %16 = arith.addf %13, %15 : vector<16x64xf32>
      %c0_14 = arith.constant 0 : index
      %c0_15 = arith.constant 0 : index
      %17 = vector.load %arg6[%c0_14, %c0_15] : memref<16x64xf32, #tpu.memory_space<vmem>>, vector<16x64xf32>
      tpu.vector_store %arg6[%c0_14, %c0_15], %16 {strides = array<i32>} : memref<16x64xf32, #tpu.memory_space<vmem>>, vector<16x64xf32>,
    } else {
    }
    return
  }
  func.func @transform_0(%arg0: i32, %arg1: i32, %arg2: i32) -> (i32, i32) {
    %c0_i32 = arith.constant 0 : i32
    return %arg0, %arg2 : i32, i32
  }
  func.func @transform_1(%arg0: i32, %arg1: i32, %arg2: i32) -> (i32, i32) {
    %c0_i32 = arith.constant 0 : i32
    return %arg2, %arg1 : i32, i32
  }
  func.func @transform_2(%arg0: i32, %arg1: i32, %arg2: i32) -> (i32, i32) {
    %c0_i32 = arith.constant 0 : i32
    %c0_i32_0 = arith.constant 0 : i32
    return %c0_i32, %arg1 : i32, i32
  }
  func.func @transform_3(%arg0: i32, %arg1: i32, %arg2: i32) -> (i32, i32) {
    %c0_i32 = arith.constant 0 : i32
    return %arg0, %arg1 : i32, i32
  }
}

module attributes {stable_mosaic.version = 11 : i64} {
  func.func @_flash_attn_kernel(%arg0: i32, %arg1: i32, %arg2: i32, %arg3: memref<1x8x8xf32, #tpu.memory_space<vmem>>, %arg4: memref<1x8x8xf32, #tpu.memory_space<vmem>>, %arg5: memref<1x8x8xf32, #tpu.memory_space<vmem>>, %arg6: memref<1x8x8xf32, #tpu.memory_space<vmem>>, %arg7: memref<1x8x1xf32, #tpu.memory_space<vmem>>, %arg8: memref<1x8x1xf32, #tpu.memory_space<vmem>>, %arg9: memref<1x8x8xf32, #tpu.memory_space<vmem>>) attributes {dimension_semantics = [#tpu.dimension_semantics<parallel>, #tpu.dimension_semantics<parallel>, #tpu.dimension_semantics<arbitrary>], iteration_bounds = array<i64: 8, 1, 1>, scalar_prefetch = 0 : i64, scratch_operands = 3 : i64, tpu.core_type = #tpu.core_type<tc>, window_params = [{transform_indices = @transform_0, window_bounds = array<i64: 1, 8, 8>}, {transform_indices = @transform_1, window_bounds = array<i64: 1, 8, 8>}, {transform_indices = @transform_2, window_bounds = array<i64: 1, 8, 8>}, {transform_indices = @transform_3, window_bounds = array<i64: 1, 8, 8>}]} {
    %c0_i32 = arith.constant 0 : i32
    %0 = arith.cmpi eq, %arg2, %c0_i32 : i32
    %1 = arith.extui %0 : i1 to i32
    %c0_i32_0 = arith.constant 0 : i32
    %2 = arith.cmpi ne, %1, %c0_i32_0 : i32
    scf.if %2 {
      %cst_33 = arith.constant 0xFF800000 : f32
      %51 = vector.broadcast %cst_33 : f32 to vector<1x8x1xf32>
      %c0_34 = arith.constant 0 : index
      %c0_35 = arith.constant 0 : index
      %c0_36 = arith.constant 0 : index
      %52 = vector.load %arg7[%c0_34, %c0_35, %c0_36] : memref<1x8x1xf32, #tpu.memory_space<vmem>>, vector<1x8x1xf32>
      tpu.vector_store %arg7[%c0_34, %c0_35, %c0_36], %51 {strides = array<i32>} : memref<1x8x1xf32, #tpu.memory_space<vmem>>, vector<1x8x1xf32>,
      %cst_37 = arith.constant 0.000000e+00 : f32
      %53 = vector.broadcast %cst_37 : f32 to vector<1x8x1xf32>
      %c0_38 = arith.constant 0 : index
      %c0_39 = arith.constant 0 : index
      %c0_40 = arith.constant 0 : index
      %54 = vector.load %arg8[%c0_38, %c0_39, %c0_40] : memref<1x8x1xf32, #tpu.memory_space<vmem>>, vector<1x8x1xf32>
      tpu.vector_store %arg8[%c0_38, %c0_39, %c0_40], %53 {strides = array<i32>} : memref<1x8x1xf32, #tpu.memory_space<vmem>>, vector<1x8x1xf32>,
      %cst_41 = arith.constant 0.000000e+00 : f32
      %55 = vector.broadcast %cst_41 : f32 to vector<1x8x8xf32>
      %c0_42 = arith.constant 0 : index
      %c0_43 = arith.constant 0 : index
      %c0_44 = arith.constant 0 : index
      %56 = vector.load %arg9[%c0_42, %c0_43, %c0_44] : memref<1x8x8xf32, #tpu.memory_space<vmem>>, vector<1x8x8xf32>
      tpu.vector_store %arg9[%c0_42, %c0_43, %c0_44], %55 {strides = array<i32>} : memref<1x8x8xf32, #tpu.memory_space<vmem>>, vector<1x8x8xf32>,
    } else {
    }
    %c0 = arith.constant 0 : index
    %c0_1 = arith.constant 0 : index
    %c0_2 = arith.constant 0 : index
    %3 = vector.load %arg3[%c0, %c0_1, %c0_2] : memref<1x8x8xf32, #tpu.memory_space<vmem>>, vector<1x8x8xf32>
    %4 = vector.shape_cast %3 : vector<1x8x8xf32> to vector<8x8xf32>
    %c0_3 = arith.constant 0 : index
    %c0_4 = arith.constant 0 : index
    %c0_5 = arith.constant 0 : index
    %5 = vector.load %arg4[%c0_3, %c0_4, %c0_5] : memref<1x8x8xf32, #tpu.memory_space<vmem>>, vector<1x8x8xf32>
    %6 = vector.shape_cast %5 : vector<1x8x8xf32> to vector<8x8xf32>
    %c0_6 = arith.constant 0 : index
    %c0_7 = arith.constant 0 : index
    %c0_8 = arith.constant 0 : index
    %7 = vector.load %arg5[%c0_6, %c0_7, %c0_8] : memref<1x8x8xf32, #tpu.memory_space<vmem>>, vector<1x8x8xf32>
    %8 = vector.shape_cast %7 : vector<1x8x8xf32> to vector<8x8xf32>
    %cst = arith.constant 0.353553385 : f32
    %9 = vector.broadcast %cst : f32 to vector<8x8xf32>
    %10 = arith.mulf %4, %9 : vector<8x8xf32>
    %11 = arith.truncf %10 : vector<8x8xf32> to vector<8x8xbf16>
    %12 = arith.truncf %6 : vector<8x8xf32> to vector<8x8xbf16>
    %13 = tpu.transpose %12, [1, 0] : vector<8x8xbf16> -> vector<8x8xbf16>
    %cst_9 = arith.constant dense<0.000000e+00> : vector<8x8xf32>
    %14 = tpu.matmul %11, %13, %cst_9 {dimension_numbers = #tpu.dot_dimension_numbers<[1], [0], [0], [1], [0, 0, 1, 1], [], []>} : vector<8x8xbf16>, vector<8x8xbf16>, vector<8x8xf32> -> vector<8x8xf32>
    %c0_10 = arith.constant 0 : index
    %c0_11 = arith.constant 0 : index
    %c0_12 = arith.constant 0 : index
    %15 = vector.load %arg7[%c0_10, %c0_11, %c0_12] : memref<1x8x1xf32, #tpu.memory_space<vmem>>, vector<1x8x1xf32>
    %16 = vector.shape_cast %15 : vector<1x8x1xf32> to vector<8x1xf32>
    %cst_13 = arith.constant dense<0xFF800000> : vector<8xf32>
    %17 = vector.multi_reduction <maximumf>, %14, %cst_13 [1] : vector<8x8xf32> to vector<8xf32>
    %18 = vector.shape_cast %17 : vector<8xf32> to vector<8x1xf32>
    %19 = arith.maximumf %16, %18 : vector<8x1xf32>
    %20 = arith.subf %16, %19 : vector<8x1xf32>
    %21 = math.exp %20 : vector<8x1xf32>
    %22 = vector.broadcast %19 : vector<8x1xf32> to vector<8x8xf32>
    %23 = arith.subf %14, %22 : vector<8x8xf32>
    %24 = math.exp %23 : vector<8x8xf32>
    %c0_14 = arith.constant 0 : index
    %c0_15 = arith.constant 0 : index
    %c0_16 = arith.constant 0 : index
    %25 = vector.load %arg8[%c0_14, %c0_15, %c0_16] : memref<1x8x1xf32, #tpu.memory_space<vmem>>, vector<1x8x1xf32>
    %26 = vector.shape_cast %25 : vector<1x8x1xf32> to vector<8x1xf32>
    %27 = arith.mulf %21, %26 : vector<8x1xf32>
    %cst_17 = arith.constant dense<0.000000e+00> : vector<8xf32>
    %28 = vector.multi_reduction <add>, %24, %cst_17 [1] : vector<8x8xf32> to vector<8xf32>
    %29 = vector.shape_cast %28 : vector<8xf32> to vector<8x1xf32>
    %30 = arith.addf %27, %29 : vector<8x1xf32>
    %c0_18 = arith.constant 0 : index
    %c0_19 = arith.constant 0 : index
    %c0_20 = arith.constant 0 : index
    %31 = vector.load %arg8[%c0_18, %c0_19, %c0_20] : memref<1x8x1xf32, #tpu.memory_space<vmem>>, vector<1x8x1xf32>
    %32 = vector.shape_cast %31 : vector<1x8x1xf32> to vector<8x1xf32>
    %33 = vector.shape_cast %30 : vector<8x1xf32> to vector<1x8x1xf32>
    tpu.vector_store %arg8[%c0_18, %c0_19, %c0_20], %33 {strides = array<i32>} : memref<1x8x1xf32, #tpu.memory_space<vmem>>, vector<1x8x1xf32>,
    %c0_21 = arith.constant 0 : index
    %c0_22 = arith.constant 0 : index
    %c0_23 = arith.constant 0 : index
    %34 = vector.load %arg9[%c0_21, %c0_22, %c0_23] : memref<1x8x8xf32, #tpu.memory_space<vmem>>, vector<1x8x8xf32>
    %35 = vector.shape_cast %34 : vector<1x8x8xf32> to vector<8x8xf32>
    %36 = vector.broadcast %21 : vector<8x1xf32> to vector<8x8xf32>
    %37 = arith.mulf %36, %35 : vector<8x8xf32>
    %38 = arith.truncf %24 : vector<8x8xf32> to vector<8x8xbf16>
    %39 = arith.truncf %8 : vector<8x8xf32> to vector<8x8xbf16>
    %cst_24 = arith.constant dense<0.000000e+00> : vector<8x8xf32>
    %40 = tpu.matmul %38, %39, %cst_24 {dimension_numbers = #tpu.dot_dimension_numbers<[1], [0], [0], [1], [0, 0, 1, 1], [], []>} : vector<8x8xbf16>, vector<8x8xbf16>, vector<8x8xf32> -> vector<8x8xf32>
    %41 = arith.addf %37, %40 : vector<8x8xf32>
    %c0_25 = arith.constant 0 : index
    %c0_26 = arith.constant 0 : index
    %c0_27 = arith.constant 0 : index
    %42 = vector.load %arg9[%c0_25, %c0_26, %c0_27] : memref<1x8x8xf32, #tpu.memory_space<vmem>>, vector<1x8x8xf32>
    %43 = vector.shape_cast %42 : vector<1x8x8xf32> to vector<8x8xf32>
    %44 = vector.shape_cast %41 : vector<8x8xf32> to vector<1x8x8xf32>
    tpu.vector_store %arg9[%c0_25, %c0_26, %c0_27], %44 {strides = array<i32>} : memref<1x8x8xf32, #tpu.memory_space<vmem>>, vector<1x8x8xf32>,
    %c0_28 = arith.constant 0 : index
    %c0_29 = arith.constant 0 : index
    %c0_30 = arith.constant 0 : index
    %45 = vector.load %arg7[%c0_28, %c0_29, %c0_30] : memref<1x8x1xf32, #tpu.memory_space<vmem>>, vector<1x8x1xf32>
    %46 = vector.shape_cast %45 : vector<1x8x1xf32> to vector<8x1xf32>
    %47 = vector.shape_cast %19 : vector<8x1xf32> to vector<1x8x1xf32>
    tpu.vector_store %arg7[%c0_28, %c0_29, %c0_30], %47 {strides = array<i32>} : memref<1x8x1xf32, #tpu.memory_space<vmem>>, vector<1x8x1xf32>,
    %c0_i32_31 = arith.constant 0 : i32
    %48 = arith.cmpi eq, %arg2, %c0_i32_31 : i32
    %49 = arith.extui %48 : i1 to i32
    %c0_i32_32 = arith.constant 0 : i32
    %50 = arith.cmpi ne, %49, %c0_i32_32 : i32
    scf.if %50 {
      %c0_33 = arith.constant 0 : index
      %c0_34 = arith.constant 0 : index
      %c0_35 = arith.constant 0 : index
      %51 = vector.load %arg9[%c0_33, %c0_34, %c0_35] : memref<1x8x8xf32, #tpu.memory_space<vmem>>, vector<1x8x8xf32>
      %52 = vector.shape_cast %51 : vector<1x8x8xf32> to vector<8x8xf32>
      %c0_36 = arith.constant 0 : index
      %c0_37 = arith.constant 0 : index
      %c0_38 = arith.constant 0 : index
      %53 = vector.load %arg8[%c0_36, %c0_37, %c0_38] : memref<1x8x1xf32, #tpu.memory_space<vmem>>, vector<1x8x1xf32>
      %54 = vector.shape_cast %53 : vector<1x8x1xf32> to vector<8x1xf32>
      %55 = vector.broadcast %54 : vector<8x1xf32> to vector<8x8xf32>
      %56 = arith.divf %52, %55 : vector<8x8xf32>
      %c0_39 = arith.constant 0 : index
      %c0_40 = arith.constant 0 : index
      %c0_41 = arith.constant 0 : index
      %57 = vector.load %arg6[%c0_39, %c0_40, %c0_41] : memref<1x8x8xf32, #tpu.memory_space<vmem>>, vector<1x8x8xf32>
      %58 = vector.shape_cast %57 : vector<1x8x8xf32> to vector<8x8xf32>
      %59 = vector.shape_cast %56 : vector<8x8xf32> to vector<1x8x8xf32>
      tpu.vector_store %arg6[%c0_39, %c0_40, %c0_41], %59 {strides = array<i32>} : memref<1x8x8xf32, #tpu.memory_space<vmem>>, vector<1x8x8xf32>,
    } else {
    }
    return
  }
  func.func @transform_0(%arg0: i32, %arg1: i32, %arg2: i32) -> (i32, i32, i32) {
    %c0_i32 = arith.constant 0 : i32
    %c0_i32_0 = arith.constant 0 : i32
    return %arg0, %arg1, %c0_i32 : i32, i32, i32
  }
  func.func @transform_1(%arg0: i32, %arg1: i32, %arg2: i32) -> (i32, i32, i32) {
    %c0_i32 = arith.constant 0 : i32
    %c0_i32_0 = arith.constant 0 : i32
    return %arg0, %arg2, %c0_i32 : i32, i32, i32
  }
  func.func @transform_2(%arg0: i32, %arg1: i32, %arg2: i32) -> (i32, i32, i32) {
    %c0_i32 = arith.constant 0 : i32
    %c0_i32_0 = arith.constant 0 : i32
    return %arg0, %arg2, %c0_i32 : i32, i32, i32
  }
  func.func @transform_3(%arg0: i32, %arg1: i32, %arg2: i32) -> (i32, i32, i32) {
    %c0_i32 = arith.constant 0 : i32
    %c0_i32_0 = arith.constant 0 : i32
    return %arg0, %arg1, %c0_i32 : i32, i32, i32
  }
}

module attributes {stable_mosaic.version = 11 : i64} {
  func.func @_add_layernorm_kernel(%arg0: i32, %arg1: memref<16x32xf32, #tpu.memory_space<vmem>>, %arg2: memref<16x32xf32, #tpu.memory_space<vmem>>, %arg3: memref<1x32xf32, #tpu.memory_space<vmem>>, %arg4: memref<1x32xf32, #tpu.memory_space<vmem>>, %arg5: memref<16x32xf32, #tpu.memory_space<vmem>>) attributes {dimension_semantics = [#tpu.dimension_semantics<parallel>], iteration_bounds = array<i64: 1>, scalar_prefetch = 0 : i64, scratch_operands = 0 : i64, tpu.core_type = #tpu.core_type<tc>, window_params = [{transform_indices = @transform_0, window_bounds = array<i64: 16, 32>}, {transform_indices = @transform_1, window_bounds = array<i64: 16, 32>}, {pipeline_mode = #tpu.pipeline_mode<synchronous>, transform_indices = @transform_2, window_bounds = array<i64: 1, 32>}, {pipeline_mode = #tpu.pipeline_mode<synchronous>, transform_indices = @transform_3, window_bounds = array<i64: 1, 32>}, {transform_indices = @transform_4, window_bounds = array<i64: 16, 32>}]} {
    %c0 = arith.constant 0 : index
    %c0_0 = arith.constant 0 : index
    %0 = vector.load %arg1[%c0, %c0_0] : memref<16x32xf32, #tpu.memory_space<vmem>>, vector<16x32xf32>
    %c0_1 = arith.constant 0 : index
    %c0_2 = arith.constant 0 : index
    %1 = vector.load %arg2[%c0_1, %c0_2] : memref<16x32xf32, #tpu.memory_space<vmem>>, vector<16x32xf32>
    %2 = arith.addf %0, %1 : vector<16x32xf32>
    %cst = arith.constant dense<0.000000e+00> : vector<16xf32>
    %3 = vector.multi_reduction <add>, %2, %cst [1] : vector<16x32xf32> to vector<16xf32>
    %4 = vector.shape_cast %3 : vector<16xf32> to vector<16x1xf32>
    %cst_3 = arith.constant 3.200000e+01 : f32
    %5 = vector.broadcast %cst_3 : f32 to vector<16x1xf32>
    %6 = arith.divf %4, %5 : vector<16x1xf32>
    %7 = vector.broadcast %6 : vector<16x1xf32> to vector<16x32xf32>
    %8 = arith.subf %2, %7 : vector<16x32xf32>
    %9 = arith.mulf %8, %8 : vector<16x32xf32>
    %cst_4 = arith.constant dense<0.000000e+00> : vector<16xf32>
    %10 = vector.multi_reduction <add>, %9, %cst_4 [1] : vector<16x32xf32> to vector<16xf32>
    %11 = vector.shape_cast %10 : vector<16xf32> to vector<16x1xf32>
    %cst_5 = arith.constant 3.200000e+01 : f32
    %12 = vector.broadcast %cst_5 : f32 to vector<16x1xf32>
    %13 = arith.divf %11, %12 : vector<16x1xf32>
    %14 = vector.broadcast %6 : vector<16x1xf32> to vector<16x32xf32>
    %15 = arith.subf %2, %14 : vector<16x32xf32>
    %cst_6 = arith.constant 9.99999974E-6 : f32
    %16 = vector.broadcast %cst_6 : f32 to vector<16x1xf32>
    %17 = arith.addf %13, %16 : vector<16x1xf32>
    %18 = math.rsqrt %17 : vector<16x1xf32>
    %19 = vector.broadcast %18 : vector<16x1xf32> to vector<16x32xf32>
    %20 = arith.mulf %15, %19 : vector<16x32xf32>
    %c0_7 = arith.constant 0 : index
    %c0_8 = arith.constant 0 : index
    %21 = vector.load %arg3[%c0_7, %c0_8] : memref<1x32xf32, #tpu.memory_space<vmem>>, vector<1x32xf32>
    %22 = vector.broadcast %21 : vector<1x32xf32> to vector<16x32xf32>
    %23 = arith.mulf %20, %22 : vector<16x32xf32>
    %c0_9 = arith.constant 0 : index
    %c0_10 = arith.constant 0 : index
    %24 = vector.load %arg4[%c0_9, %c0_10] : memref<1x32xf32, #tpu.memory_space<vmem>>, vector<1x32xf32>
    %25 = vector.broadcast %24 : vector<1x32xf32> to vector<16x32xf32>
    %26 = arith.addf %23, %25 : vector<16x32xf32>
    %c0_11 = arith.constant 0 : index
    %c0_12 = arith.constant 0 : index
    %27 = vector.load %arg5[%c0_11, %c0_12] : memref<16x32xf32, #tpu.memory_space<vmem>>, vector<16x32xf32>
    tpu.vector_store %arg5[%c0_11, %c0_12], %26 {strides = array<i32>} : memref<16x32xf32, #tpu.memory_space<vmem>>, vector<16x32xf32>,
    return
  }
  func.func @transform_0(%arg0: i32) -> (i32, i32) {
    %c0_i32 = arith.constant 0 : i32
    %c0_i32_0 = arith.constant 0 : i32
    return %arg0, %c0_i32 : i32, i32
  }
  func.func @transform_1(%arg0: i32) -> (i32, i32) {
    %c0_i32 = arith.constant 0 : i32
    %c0_i32_0 = arith.constant 0 : i32
    return %arg0, %c0_i32 : i32, i32
  }
  func.func @transform_2(%arg0: i32) -> (i32, i32) {
    %c0_i32 = arith.constant 0 : i32
    %c0_i32_0 = arith.constant 0 : i32
    %c0_i32_1 = arith.constant 0 : i32
    return %c0_i32, %c0_i32_0 : i32, i32
  }
  func.func @transform_3(%arg0: i32) -> (i32, i32) {
    %c0_i32 = arith.constant 0 : i32
    %c0_i32_0 = arith.constant 0 : i32
    %c0_i32_1 = arith.constant 0 : i32
    return %c0_i32, %c0_i32_0 : i32, i32
  }
  func.func @transform_4(%arg0: i32) -> (i32, i32) {
    %c0_i32 = arith.constant 0 : i32
    %c0_i32_0 = arith.constant 0 : i32
    return %arg0, %c0_i32 : i32, i32
  }
}

</mosaic_0001>

<bundles_post_ra>
// kernel: transformer_forward.46
= control target key start
LH: loop header
LB: loop body
LE: loop exit
PB: predicated region body
PF: predicated region fallthrough
CT: control target
= control target key end

     0   :  { %vm19_vm0 = vcmask 785408   ;;  %v132_v0 = vmov 0.0   ;;  %vm133_vm1 = vmmov 0   ;;  %vm43_vm2 = vcmask 261120   ;;  %s181_s1 = inlined_call_operand.vmem [shape: bf16[32,96], index: 1, kind: input, shape index: {}]   ;;  %s182_s0 = inlined_call_operand.vmem [shape: f32[16,32], index: 0, kind: input, shape index: {}]   ;;  %s183_s2 = inlined_call_operand.vmem [shape: f32[1,96], index: 2, kind: input, shape index: {}]   ;;  %s184_s3 = inlined_call_operand.vmem [shape: f32[16,96], index: 3, kind: output, shape index: {}]  }
   0x1   :  { %120 = vmatprep.subr.bf16.mxu0 %v132_v0  ;;  %v130_v1 = vld [vmem:[%s181_s1] sm:$0xff]   ;;  %124 = vmatprep.mubr.msk.bf16.mxu0 %vm133_vm1, %v132_v0  ;;  %20 = vst.msk [vmem:[#allocation2] sm:$0xff] %vm19_vm0, %v132_v0  ;;  %21 = vst.msk [vmem:[#allocation2 + $0x8] sm:$0xff] %vm19_vm0, %v132_v0  ;;  %v131_v2 = vld [vmem:[%s181_s1 + $0x8] sm:$0xff]  }
   0x2   :  { %121 = vmatpush3.bf16.msra.mxu0 %v130_v1  ;;  %v24_v3 = vld [vmem:[%s182_s0] sm:$0xff]  ;;  %v25_v4 = vld [vmem:[%s182_s0 + $0x8] sm:$0xff] }
   0x3   :  { %122 = vmatprep.subr.bf16.mxu0 %v132_v0  ;;  %v26_v5 = vpack.c.bf16 %v25_v4, %v24_v3  ;;  %v116_v14 = vld [vmem:[%s183_s2] ss:$0 sm:$0xff] }
   0x6   :  { %123 = vmatpush3.bf16.msra.mxu0 %v131_v2 }
   0x8   :  { %v22_v6 = vld [vmem:[#allocation2] sm:$0xff]  ;;  %v23_v8 = vld [vmem:[#allocation2 + $0x8] sm:$0xff] }
   0x9   :  { %125 = vmatmul.mubr.msk.bf16.vlgmr.msra.gmra.mrb[0].mxu0 %vm43_vm2, %v26_v5 }
  0xdc   :  { %v81_v7 = vpop.f32.mrb[0].mxu0 }
  0xdd   :  { %v88_v9 = vadd.f32 %v81_v7, %v22_v6  ;;  %v126_v10 = vpop.f32.mrb[1].mxu0 }
  0xde   :  { %v84_v11 = vpop.f32.mrb[2].mxu0 }
  0xdf   :  { %91 = vst.msk [vmem:[#allocation2] sm:$0xff] %vm19_vm0, %v88_v9  ;;  %v89_v12 = vadd.f32 %v84_v11, %v23_v8  ;;  %v127_v13 = vpop.f32.mrb[3].mxu0 }
  0xe1   :  { %92 = vst.msk [vmem:[#allocation2 + $0x8] sm:$0xff] %vm19_vm0, %v89_v12 }
  0xe6   :  { %v96_v15 = vld [vmem:[#allocation2] sm:$0xff] }
  0xe7   :  { %v105_v16 = vadd.f32 %v116_v14, %v96_v15 }
  0xe8   :  { %v97_v17 = vld [vmem:[#allocation2 + $0x8] sm:$0xff] }
  0xe9   :  { %107 = vst.msk [vmem:[%s184_s3] sm:$0xff] %vm19_vm0, %v105_v16  ;;  %v106_v18 = vadd.f32 %v116_v14, %v97_v17 }
  0xeb   :  { %108 = vst.msk [vmem:[%s184_s3 + $0x8] sm:$0xff] %vm19_vm0, %v106_v18 }

// kernel: transformer_forward.49
= control target key start
LH: loop header
LB: loop body
LE: loop exit
PB: predicated region body
PF: predicated region fallthrough
CT: control target
= control target key end

     0   :  { %vm23_vm0 = vcmask 261120   ;;  %s136_s0 = inlined_call_operand.vmem [shape: f32[16,32], index: 0, kind: input, shape index: {}]   ;;  %s137_s1 = inlined_call_operand.vmem [shape: f32[16,32], index: 1, kind: input, shape index: {}]   ;;  %s138_s2 = inlined_call_operand.vmem [shape: f32[1,32], index: 2, kind: input, shape index: {}]   ;;  %s139_s3 = inlined_call_operand.vmem [shape: f32[1,32], index: 3, kind: input, shape index: {}]   ;;  %s140_s4 = inlined_call_operand.vmem [shape: f32[16,32], index: 4, kind: output, shape index: {}]  }
   0x1   :  { %v17_v0 = vld [vmem:[%s136_s0] sm:$0xff]  ;;  %v18_v2 = vld [vmem:[%s136_s0 + $0x8] sm:$0xff] }
   0x2   :  { %v19_v1 = vld [vmem:[%s137_s1] sm:$0xff]  ;;  %v20_v4 = vld [vmem:[%s137_s1 + $0x8] sm:$0xff] }
   0x3   :  { %v21_v3 = vadd.f32 %v19_v1, %v17_v0  ;;  %v22_v5 = vadd.f32 %v20_v4, %v18_v2  ;;  %v75_v25 = vld [vmem:[%s138_s2] ss:$0 sm:$0xff] }
   0x4   :  { %v76_v27 = vld [vmem:[%s139_s3] ss:$0 sm:$0xff] }
   0x5   :  { %v24_v6 = vsel %vm23_vm0, %v21_v3, 0.0  ;;  %v27_v7 = vsel %vm23_vm0, %v22_v5, 0.0 }
   0x6   :  { %25 = vadd.xlane.f32.xlu0 %v24_v6 }
   0xa   :  { %28 = vadd.xlane.f32.xlu0 %v27_v7 }
  0x93   :  { %v26_v8 = vpop.xlane.xlu0 %25 }
  0x94   :  { %v31_v9 = vmul.f32 0.03125, %v26_v8 }
  0x96   :  { %v33_v10 = vsub.f32 %v21_v3, %v31_v9 }
  0x97   :  { %v29_v11 = vpop.xlane.xlu0 %28 }
  0x98   :  { %v32_v12 = vmul.f32 0.03125, %v29_v11  ;;  %v35_v13 = vmul.f32 %v33_v10, %v33_v10 }
  0x9a   :  { %v34_v14 = vsub.f32 %v22_v5, %v32_v12  ;;  %v37_v15 = vsel %vm23_vm0, %v35_v13, 0.0 }
  0x9b   :  { %38 = vadd.xlane.f32.xlu1 %v37_v15 }
  0x9c   :  { %v36_v16 = vmul.f32 %v34_v14, %v34_v14 }
  0x9e   :  { %v40_v17 = vsel %vm23_vm0, %v36_v16, 0.0 }
  0x9f   :  { %41 = vadd.xlane.f32.xlu1 %v40_v17 }
 0x128   :  { %v39_v18 = vpop.xlane.xlu1 %38 }
 0x129   :  { %v43_v19 = vmul.f32 0.03125, %v39_v18 }
 0x12b   :  { %v45_v20 = vadd.f32 1e-05, %v43_v19 }
 0x12c   :  { %v42_v21 = vpop.xlane.xlu1 %41 }
 0x12d   :  { %77 = vrsqrt.f32 %v45_v20  ;;  %v44_v22 = vmul.f32 0.03125, %v42_v21 }
 0x12f   :  { %v46_v23 = vadd.f32 1e-05, %v44_v22 }
 0x131   :  { %79 = vrsqrt.f32 %v46_v23 }
 0x137   :  { %v78_v24 = vpop.eup %77 }
 0x138   :  { %v49_v26 = vmul.f32 %v78_v24, %v33_v10 }
 0x13a   :  { %v58_v28 = vmul.f32 %v75_v25, %v49_v26 }
 0x13b   :  { %v80_v29 = vpop.eup %79 }
 0x13c   :  { %v67_v30 = vadd.f32 %v76_v27, %v58_v28  ;;  %v50_v31 = vmul.f32 %v80_v29, %v34_v14 }
 0x13e   :  { %69 = vst.msk [vmem:[%s140_s4] sm:$0xff] %vm23_vm0, %v67_v30  ;;  %v59_v32 = vmul.f32 %v75_v25, %v50_v31 }
 0x140   :  { %v68_v33 = vadd.f32 %v76_v27, %v59_v32 }
 0x142   :  { %70 = vst.msk [vmem:[%s140_s4 + $0x8] sm:$0xff] %vm23_vm0, %v68_v33 }

// kernel: transformer_forward.47
= control target key start
LH: loop header
LB: loop body
LE: loop exit
PB: predicated region body
PF: predicated region fallthrough
CT: control target
= control target key end

     0   :  { %s653_s12 = smov 0   ;;  %s655_s13 = smov 0   ;;  %s710_s0 = inlined_call_operand.vmem [shape: f32[8,8,8], index: 0, kind: input, shape index: {}]   ;;  %s711_s1 = inlined_call_operand.vmem [shape: f32[8,8,8], index: 1, kind: input, shape index: {}]   ;;  %s712_s2 = inlined_call_operand.vmem [shape: f32[8,8,8], index: 2, kind: input, shape index: {}]   ;;  %s713_s3 = inlined_call_operand.vmem [shape: f32[8,8,8], index: 3, kind: output, shape index: {}]  }
   0x1   :  { %s657_s14 = smov 0  }
   0x2 LB: > { %s32_s15 = sadd.s32 1, %s622_s13  ;;  %p542_p0 = scmp.ge.s32.totalorder %s626_s14, 1  ;;  %s626_s14 = sphi %s657_s14, %s13_s14   ;;  %s622_s13 = sphi %s655_s13, %s715_s13   ;;  %s618_s12 = sphi %s653_s12, %s714_s12  }
   0x3   : > { %p34_p1 = scmp.ge.s32.totalorder %s32_s15, 8  ;;  %p190_p2 = scmp.lt.s32.totalorder %s626_s14, 9 }
   0x5   : > { %s717_s15 = smov (%p34_p1, %s32_s15), 0  ;;  %p191_p3 = pnand %p542_p0, %p190_p2 }
   0x6   : > { %p232_p4 = scmp.lt.s32.totalorder (!%p191_p3), %s618_s12, 7  ;;  %vm268_vm0 = vcmask (!%p191_p3), 64512   ;;  %v628_v0 = vmov (!%p191_p3), 0.0   ;;  %vm629_vm1 = vmmov (!%p191_p3), 0   ;;  %vm265_vm2 = vcmask (!%p191_p3), 7168  }
   0x7   : > { %194 = sbr.rel (%p191_p3) target bundleno = 825 (0x339), region = 32  ;;  %555 = vmatprep.subr.bf16.mxu0 (!%p191_p3), %v628_v0  ;;  %269 = vst.msk [vmem:[#allocation4] sm:$0xff] (!%p191_p3), %vm268_vm0, %v628_v0  ;;  %557 = vmatprep.mubr.msk.bf16.mxu0 (!%p191_p3), %vm629_vm1, %v628_v0  ;;  %v630_v7 = vmov (!%p191_p3), -inf   ;;  %v271_v8 = vlaneseq (!%p191_p3)  ;;  %v631_v11 = vmov (!%p191_p3), -1e+09   ;;  %v632_v19 = vmov (!%p191_p3), 0  }
   0x8   : > { %561 = vmatprep.subr.bf16.mxu1 (!%p191_p3), %v628_v0  ;;  %563 = vmatprep.mubr.msk.bf16.mxu1 (!%p191_p3), %vm629_vm1, %v628_v0  ;;  %266 = vst.msk [vmem:[#allocation2] sm:$0xff] (!%p191_p3), %vm265_vm2, %v630_v7  ;;  %267 = vst.msk [vmem:[#allocation3] sm:$0xff] (!%p191_p3), %vm265_vm2, %v628_v0  ;;  %vm371_vm4 = vcmask (!%p191_p3), 1043456  }
   0x9   : > { %v272_v9 = vshrl.u32 (!%p191_p3), %v271_v8, 7  ;;  %v277_v10 = vand.u32 (!%p191_p3), 127, %v271_v8  ;;  %596 = vset.pattern.permute.xlu0 (!%p191_p3), %v632_v19  ;;  %597 = vset.pattern.permute.xlu1 (!%p191_p3), %v632_v19 }
   0xb   : > { %vm280_vm3 = vcmp.ge.s32.totalorder (!%p191_p3), %v272_v9, %v277_v10 }
   0xc   : > { %v281_v12 = vsel (!%p191_p3), %vm280_vm3, 0.0, %v631_v11 }
   0xe   : > { %s719_s12 = smov (!%p232_p4, %s618_s12), 7  ;;  %v359_v40 = vld [vmem:[#allocation4] sm:$0xff] }
   0xf   : > { %s672_s16 = sshll.u32 %s719_s12, 3  ;;  %v335_v20 = vld [vmem:[#allocation2] sm:$0xff]  ;;  %v351_v35 = vld [vmem:[#allocation3] sm:$0xff] }
  0x10   : > { %s245_s19 = scalar_lea.vmem %s711_s1, %s672_s16  ;;  %s238_s22 = scalar_lea.vmem %s710_s0, %s672_s16 }
  0x11   : > { %v283_v1 = vld [vmem:[%s245_s19] sm:$0xff]  ;;  %s252_s25 = scalar_lea.vmem %s712_s2, %s672_s16  ;;  %s259_s28 = scalar_lea.vmem %s713_s3, %s672_s16 }
  0x12   : > { %v287_v2 = vpack.c.bf16 %v283_v1, %v283_v1  ;;  %v282_v3 = vld [vmem:[%s238_s22] sm:$0xff] }
  0x13   : > { %v285_v5 = vmul.f32 0.35355338, %v282_v3  ;;  %v284_v24 = vld [vmem:[%s252_s25] sm:$0xff] }
  0x14   : > { %v293_v4 = vsel %vm268_vm0, %v287_v2, 0  ;;  %v367_v25 = vpack.c.bf16 %v284_v24, %v284_v24 }
  0x15   : > { %556 = vmatpush3.bf16.xpose.msra.mxu0 %v293_v4  ;;  %v286_v6 = vpack.c.bf16 %v285_v5, %v285_v5 }
  0x16   : > { %v373_v26 = vsel %vm371_vm4, %v367_v25, 0 }
  0x17   : > { %562 = vmatpush3.bf16.msra.mxu1 %v373_v26 }
  0x1c   : > { %558 = vmatmul.mubr.msk.bf16.vlgmr.msra.gmra.mrb[0].mxu0 %vm268_vm0, %v286_v6 }
  0xef   : > { %v329_v13 = vpop.f32.mrb[0].mxu0 }
  0xf0   : > { %v330_v14 = vadd.f32 %v329_v13, %v281_v12  ;;  %v559_v15 = vpop.f32.mrb[1].mxu0 }
  0xf1   : > { %v332_v16 = vpop.f32.mrb[2].mxu0 }
  0xf2   : > { %v560_v17 = vpop.f32.mrb[3].mxu0  ;;  %v336_v18 = vsel %vm268_vm0, %v330_v14, -inf }
  0xf3   : > { %337 = vmax.xlane.f32.xlu0 %v336_v18 }
 0x180   : > { %v338_v21 = vpop.xlane.xlu0 %337 }
 0x181   : > { %v339_v22 = vmax.f32 %v335_v20, %v338_v21 }
 0x183   : > { %v340_v23 = vsub.f32 %v335_v20, %v339_v22  ;;  %417 = vst.msk [vmem:[#allocation2] sm:$0xff] %vm265_vm2, %v339_v22  ;;  %345 = vperm.xlu0 %596, %v339_v22  }
 0x185   : > { %v341_v33 = vmul.f32 1.442695, %v340_v23 }
 0x202   : > { %v346_v27 = vpop.permute.xlu0 %345 }
 0x203   : > { %v348_v28 = vsub.f32 %v330_v14, %v346_v27 }
 0x205   : > { %v349_v29 = vmul.f32 1.442695, %v348_v28 }
 0x207   : > { %598 = vpow2.f32 %v349_v29 }
 0x208   : > { %600 = vpow2.f32 %v341_v33 }
 0x211   : > { %v599_v30 = vpop.eup %598 }
 0x212   : > { %v353_v31 = vsel %vm268_vm0, %v599_v30, 0.0  ;;  %v366_v32 = vpack.c.bf16 %v599_v30, %v599_v30  ;;  %v601_v34 = vpop.eup %600 }
 0x213   : > { %354 = vadd.xlane.f32.xlu1 %v353_v31  ;;  %v352_v36 = vmul.f32 %v601_v34, %v351_v35 }
 0x214   : > { %564 = vmatmul.mubr.msk.bf16.vlgmr.msra.gmra.mrb[0].mxu1 %vm268_vm0, %v366_v32 }
 0x224   : > { %362 = vperm.xlu1 %597, %v601_v34  }
 0x2a0   : > { %v355_v37 = vpop.xlane.xlu1 %354 }
 0x2a1   : > { %v356_v38 = vadd.f32 %v355_v37, %v352_v36 }
 0x2a3   : > { %358 = vst.msk [vmem:[#allocation3] sm:$0xff] %vm265_vm2, %v356_v38 }
 0x2a4   : > { %v363_v41 = vpop.permute.xlu1 %362 }
 0x2a5   : > { %v365_v42 = vmul.f32 %v363_v41, %v359_v40 }
 0x2aa   : > { %v422_v39 = vld [vmem:[#allocation3] sm:$0xff] }
 0x2ab   : > { %425 = vperm.xlu1 %597, %v422_v39  }
 0x2e7   : > { %v409_v43 = vpop.f32.mrb[0].mxu1 }
 0x2e8   : > { %v415_v44 = vadd.f32 %v409_v43, %v365_v42  ;;  %v565_v45 = vpop.f32.mrb[1].mxu1 }
 0x2e9   : > { %v412_v46 = vpop.f32.mrb[2].mxu1 }
 0x2ea   : > { %416 = vst.msk [vmem:[#allocation4] sm:$0xff] %vm268_vm0, %v415_v44  ;;  %v566_v47 = vpop.f32.mrb[3].mxu1 }
 0x2f1   : > { %v421_v50 = vld [vmem:[#allocation4] sm:$0xff] }
 0x32a   : > { %v426_v48 = vpop.permute.xlu1 %425 }
 0x32b   : > { %602 = vrcp.f32 %v426_v48 }
 0x335   : > { %v603_v49 = vpop.eup %602 }
 0x336   : > { %v429_v51 = vmul.f32 %v603_v49, %v421_v50 }
 0x338   : > { %430 = vst.msk [vmem:[%s259_s28] sm:$0xff] %vm268_vm0, %v429_v51 }
 0x339 PF: > { %s13_s14 = sadd.s32 1, %s626_s14   ;;  %s714_s12 = smov %s622_s13 }
 0x33a   : > { %p10_p5 = scmp.ge.s32.totalorder %s13_s14, 10   ;;  %s715_s13 = smov %s717_s15 }
 0x33c   :  { %12 = sbr.rel (!%p10_p5) target bundleno = 2 (0x2), region = 76 }

// kernel: transformer_forward.48
= control target key start
LH: loop header
LB: loop body
LE: loop exit
PB: predicated region body
PF: predicated region fallthrough
CT: control target
= control target key end

     0   :  { %vm19_vm0 = vcmask 261120   ;;  %v131_v0 = vmov 0.0   ;;  %vm132_vm1 = vmmov 0   ;;  %s181_s1 = inlined_call_operand.vmem [shape: bf16[32,32], index: 1, kind: input, shape index: {}]   ;;  %s182_s0 = inlined_call_operand.vmem [shape: f32[16,32], index: 0, kind: input, shape index: {}]   ;;  %s183_s2 = inlined_call_operand.vmem [shape: f32[1,32], index: 2, kind: input, shape index: {}]   ;;  %s184_s3 = inlined_call_operand.vmem [shape: f32[16,32], index: 3, kind: output, shape index: {}]  }
   0x1   :  { %119 = vmatprep.subr.bf16.mxu0 %v131_v0  ;;  %v129_v1 = vld [vmem:[%s181_s1] sm:$0xff]   ;;  %123 = vmatprep.mubr.msk.bf16.mxu0 %vm132_vm1, %v131_v0  ;;  %20 = vst.msk [vmem:[#allocation2] sm:$0xff] %vm19_vm0, %v131_v0  ;;  %21 = vst.msk [vmem:[#allocation2 + $0x8] sm:$0xff] %vm19_vm0, %v131_v0  ;;  %v130_v2 = vld [vmem:[%s181_s1 + $0x8] sm:$0xff]  }
   0x2   :  { %120 = vmatpush3.bf16.msra.mxu0 %v129_v1  ;;  %v24_v3 = vld [vmem:[%s182_s0] sm:$0xff]  ;;  %v25_v4 = vld [vmem:[%s182_s0 + $0x8] sm:$0xff] }
   0x3   :  { %121 = vmatprep.subr.bf16.mxu0 %v131_v0  ;;  %v26_v5 = vpack.c.bf16 %v25_v4, %v24_v3  ;;  %v115_v14 = vld [vmem:[%s183_s2] ss:$0 sm:$0xff] }
   0x6   :  { %122 = vmatpush3.bf16.msra.mxu0 %v130_v2 }
   0x8   :  { %v22_v6 = vld [vmem:[#allocation2] sm:$0xff]  ;;  %v23_v8 = vld [vmem:[#allocation2 + $0x8] sm:$0xff] }
   0x9   :  { %124 = vmatmul.mubr.msk.bf16.vlgmr.msra.gmra.mrb[0].mxu0 %vm19_vm0, %v26_v5 }
  0xdc   :  { %v81_v7 = vpop.f32.mrb[0].mxu0 }
  0xdd   :  { %v88_v9 = vadd.f32 %v81_v7, %v22_v6  ;;  %v125_v10 = vpop.f32.mrb[1].mxu0 }
  0xde   :  { %v84_v11 = vpop.f32.mrb[2].mxu0 }
  0xdf   :  { %90 = vst.msk [vmem:[#allocation2] sm:$0xff] %vm19_vm0, %v88_v9  ;;  %v89_v12 = vadd.f32 %v84_v11, %v23_v8  ;;  %v126_v13 = vpop.f32.mrb[3].mxu0 }
  0xe1   :  { %91 = vst.msk [vmem:[#allocation2 + $0x8] sm:$0xff] %vm19_vm0, %v89_v12 }
  0xe6   :  { %v95_v15 = vld [vmem:[#allocation2] sm:$0xff] }
  0xe7   :  { %v104_v16 = vadd.f32 %v115_v14, %v95_v15 }
  0xe8   :  { %v96_v17 = vld [vmem:[#allocation2 + $0x8] sm:$0xff] }
  0xe9   :  { %106 = vst.msk [vmem:[%s184_s3] sm:$0xff] %vm19_vm0, %v104_v16  ;;  %v105_v18 = vadd.f32 %v115_v14, %v96_v17 }
  0xeb   :  { %107 = vst.msk [vmem:[%s184_s3 + $0x8] sm:$0xff] %vm19_vm0, %v105_v18 }

// kernel: transformer_forward.35
= control target key start
LH: loop header
LB: loop body
LE: loop exit
PB: predicated region body
PF: predicated region fallthrough
CT: control target
= control target key end

     0   :  { %s720_s15 = smov 0   ;;  %s722_s16 = smov 0   ;;  %s780_s0 = inlined_call_operand.vmem [shape: f32[8,8,8], index: 0, kind: input, shape index: {}]   ;;  %s781_s1 = inlined_call_operand.vmem [shape: f32[8,8,8], index: 1, kind: input, shape index: {}]   ;;  %s782_s2 = inlined_call_operand.vmem [shape: f32[8,8,8], index: 2, kind: input, shape index: {}]   ;;  %s783_s3 = inlined_call_operand.vmem [shape: f32[8,8], index: 3, kind: input, shape index: {}]   ;;  %s784_s4 = inlined_call_operand.vmem [shape: f32[8,8,8], index: 4, kind: output, shape index: {}]  }
   0x1   :  { %s724_s17 = smov 0  }
   0x2 LB: > { %s33_s18 = sadd.s32 1, %s685_s16  ;;  %p606_p0 = scmp.ge.s32.totalorder %s689_s17, 1  ;;  %s689_s17 = sphi %s724_s17, %s14_s17   ;;  %s685_s16 = sphi %s722_s16, %s786_s16   ;;  %s681_s15 = sphi %s720_s15, %s785_s15  }
   0x3   : > { %p35_p1 = scmp.ge.s32.totalorder %s33_s18, 8  ;;  %p229_p2 = scmp.lt.s32.totalorder %s689_s17, 9 }
   0x5   : > { %s788_s18 = smov (%p35_p1, %s33_s18), 0  ;;  %p230_p3 = pnand %p606_p0, %p229_p2 }
   0x6   : > { %p280_p4 = scmp.lt.s32.totalorder (!%p230_p3), %s681_s15, 7  ;;  %vm323_vm0 = vcmask (!%p230_p3), 64512   ;;  %v691_v0 = vmov (!%p230_p3), 0.0   ;;  %vm692_vm1 = vmmov (!%p230_p3), 0   ;;  %vm320_vm2 = vcmask (!%p230_p3), 7168   ;;  %v325_v8 = vld [vmem:[%s783_s3] sm:$0xff] (!%p230_p3) }
   0x7   : > { %233 = sbr.rel (%p230_p3) target bundleno = 825 (0x339), region = 36  ;;  %619 = vmatprep.subr.bf16.mxu0 (!%p230_p3), %v691_v0  ;;  %324 = vst.msk [vmem:[#allocation4] sm:$0xff] (!%p230_p3), %vm323_vm0, %v691_v0  ;;  %621 = vmatprep.mubr.msk.bf16.mxu0 (!%p230_p3), %vm692_vm1, %v691_v0  ;;  %v693_v7 = vmov (!%p230_p3), -inf   ;;  %v694_v15 = vmov (!%p230_p3), 0   ;;  %vm415_vm3 = vcmask (!%p230_p3), 1043456  }
   0x8   : > { %625 = vmatprep.subr.bf16.mxu1 (!%p230_p3), %v691_v0  ;;  %627 = vmatprep.mubr.msk.bf16.mxu1 (!%p230_p3), %vm692_vm1, %v691_v0  ;;  %321 = vst.msk [vmem:[#allocation2] sm:$0xff] (!%p230_p3), %vm320_vm2, %v693_v7  ;;  %322 = vst.msk [vmem:[#allocation3] sm:$0xff] (!%p230_p3), %vm320_vm2, %v691_v0 }
   0x9   : > { %659 = vset.pattern.permute.xlu0 (!%p230_p3), %v694_v15  ;;  %660 = vset.pattern.permute.xlu1 (!%p230_p3), %v694_v15 }
   0xe   : > { %s790_s15 = smov (!%p280_p4, %s681_s15), 7  ;;  %v403_v36 = vld [vmem:[#allocation4] sm:$0xff] }
   0xf   : > { %s739_s19 = sshll.u32 %s790_s15, 3  ;;  %v379_v16 = vld [vmem:[#allocation2] sm:$0xff]  ;;  %v395_v31 = vld [vmem:[#allocation3] sm:$0xff] }
  0x10   : > { %s293_s22 = scalar_lea.vmem %s781_s1, %s739_s19  ;;  %s286_s25 = scalar_lea.vmem %s780_s0, %s739_s19 }
  0x11   : > { %v327_v1 = vld [vmem:[%s293_s22] sm:$0xff]  ;;  %s300_s30 = scalar_lea.vmem %s782_s2, %s739_s19  ;;  %s314_s7 = scalar_lea.vmem %s784_s4, %s739_s19 }
  0x12   : > { %v331_v2 = vpack.c.bf16 %v327_v1, %v327_v1  ;;  %v326_v3 = vld [vmem:[%s286_s25] sm:$0xff] }
  0x13   : > { %v329_v5 = vmul.f32 0.35355338, %v326_v3  ;;  %v328_v20 = vld [vmem:[%s300_s30] sm:$0xff] }
  0x14   : > { %v337_v4 = vsel %vm323_vm0, %v331_v2, 0  ;;  %v411_v21 = vpack.c.bf16 %v328_v20, %v328_v20 }
  0x15   : > { %620 = vmatpush3.bf16.xpose.msra.mxu0 %v337_v4  ;;  %v330_v6 = vpack.c.bf16 %v329_v5, %v329_v5 }
  0x16   : > { %v417_v22 = vsel %vm415_vm3, %v411_v21, 0 }
  0x17   : > { %626 = vmatpush3.bf16.msra.mxu1 %v417_v22 }
  0x1c   : > { %622 = vmatmul.mubr.msk.bf16.vlgmr.msra.gmra.mrb[0].mxu0 %vm323_vm0, %v330_v6 }
  0xef   : > { %v373_v9 = vpop.f32.mrb[0].mxu0 }
  0xf0   : > { %v374_v10 = vadd.f32 %v373_v9, %v325_v8  ;;  %v623_v11 = vpop.f32.mrb[1].mxu0 }
  0xf1   : > { %v376_v12 = vpop.f32.mrb[2].mxu0 }
  0xf2   : > { %v624_v13 = vpop.f32.mrb[3].mxu0  ;;  %v380_v14 = vsel %vm323_vm0, %v374_v10, -inf }
  0xf3   : > { %381 = vmax.xlane.f32.xlu0 %v380_v14 }
 0x180   : > { %v382_v17 = vpop.xlane.xlu0 %381 }
 0x181   : > { %v383_v18 = vmax.f32 %v379_v16, %v382_v17 }
 0x183   : > { %v384_v19 = vsub.f32 %v379_v16, %v383_v18  ;;  %461 = vst.msk [vmem:[#allocation2] sm:$0xff] %vm320_vm2, %v383_v18  ;;  %389 = vperm.xlu0 %659, %v383_v18  }
 0x185   : > { %v385_v29 = vmul.f32 1.442695, %v384_v19 }
 0x202   : > { %v390_v23 = vpop.permute.xlu0 %389 }
 0x203   : > { %v392_v24 = vsub.f32 %v374_v10, %v390_v23 }
 0x205   : > { %v393_v25 = vmul.f32 1.442695, %v392_v24 }
 0x207   : > { %661 = vpow2.f32 %v393_v25 }
 0x208   : > { %663 = vpow2.f32 %v385_v29 }
 0x211   : > { %v662_v26 = vpop.eup %661 }
 0x212   : > { %v397_v27 = vsel %vm323_vm0, %v662_v26, 0.0  ;;  %v410_v28 = vpack.c.bf16 %v662_v26, %v662_v26  ;;  %v664_v30 = vpop.eup %663 }
 0x213   : > { %398 = vadd.xlane.f32.xlu1 %v397_v27  ;;  %v396_v32 = vmul.f32 %v664_v30, %v395_v31 }
 0x214   : > { %628 = vmatmul.mubr.msk.bf16.vlgmr.msra.gmra.mrb[0].mxu1 %vm323_vm0, %v410_v28 }
 0x224   : > { %406 = vperm.xlu1 %660, %v664_v30  }
 0x2a0   : > { %v399_v33 = vpop.xlane.xlu1 %398 }
 0x2a1   : > { %v400_v34 = vadd.f32 %v399_v33, %v396_v32 }
 0x2a3   : > { %402 = vst.msk [vmem:[#allocation3] sm:$0xff] %vm320_vm2, %v400_v34 }
 0x2a4   : > { %v407_v37 = vpop.permute.xlu1 %406 }
 0x2a5   : > { %v409_v38 = vmul.f32 %v407_v37, %v403_v36 }
 0x2aa   : > { %v466_v35 = vld [vmem:[#allocation3] sm:$0xff] }
 0x2ab   : > { %469 = vperm.xlu1 %660, %v466_v35  }
 0x2e7   : > { %v453_v39 = vpop.f32.mrb[0].mxu1 }
 0x2e8   : > { %v459_v40 = vadd.f32 %v453_v39, %v409_v38  ;;  %v629_v41 = vpop.f32.mrb[1].mxu1 }
 0x2e9   : > { %v456_v42 = vpop.f32.mrb[2].mxu1 }
 0x2ea   : > { %460 = vst.msk [vmem:[#allocation4] sm:$0xff] %vm323_vm0, %v459_v40  ;;  %v630_v43 = vpop.f32.mrb[3].mxu1 }
 0x2f1   : > { %v465_v46 = vld [vmem:[#allocation4] sm:$0xff] }
 0x32a   : > { %v470_v44 = vpop.permute.xlu1 %469 }
 0x32b   : > { %665 = vrcp.f32 %v470_v44 }
 0x335   : > { %v666_v45 = vpop.eup %665 }
 0x336   : > { %v473_v47 = vmul.f32 %v666_v45, %v465_v46 }
 0x338   : > { %474 = vst.msk [vmem:[%s314_s7] sm:$0xff] %vm323_vm0, %v473_v47 }
 0x339 PF: > { %s14_s17 = sadd.s32 1, %s689_s17   ;;  %s785_s15 = smov %s685_s16 }
 0x33a   : > { %p11_p5 = scmp.ge.s32.totalorder %s14_s17, 10   ;;  %s786_s16 = smov %s788_s18 }
 0x33c   :  { %13 = sbr.rel (!%p11_p5) target bundleno = 2 (0x2), region = 83 }

// kernel: transformer_forward.38
= control target key start
LH: loop header
LB: loop body
LE: loop exit
PB: predicated region body
PF: predicated region fallthrough
CT: control target
= control target key end

     0   :  { %vm25_vm0 = vcmask 261120   ;;  %v251_v0 = vmov 0.0   ;;  %vm252_vm1 = vmmov 0   ;;  %vm136_vm2 = vcmask 523264   ;;  %s326_s1 = inlined_call_operand.vmem [shape: bf16[32,64], index: 1, kind: input, shape index: {}]   ;;  %s327_s0 = inlined_call_operand.vmem [shape: f32[16,32], index: 0, kind: input, shape index: {}]   ;;  %s328_s3 = inlined_call_operand.vmem [shape: bf16[64,32], index: 3, kind: input, shape index: {}]   ;;  %s329_s2 = inlined_call_operand.vmem [shape: f32[1,64], index: 2, kind: input, shape index: {}]   ;;  %s330_s4 = inlined_call_operand.vmem [shape: f32[1,32], index: 4, kind: input, shape index: {}]   ;;  %s331_s5 = inlined_call_operand.vmem [shape: f32[16,32], index: 5, kind: output, shape index: {}]  }
   0x1   :  { %223 = vmatprep.subr.bf16.mxu0 %v251_v0  ;;  %v245_v1 = vld [vmem:[%s326_s1] sm:$0xff]   ;;  %227 = vmatprep.mubr.msk.bf16.mxu0 %vm252_vm1, %v251_v0  ;;  %26 = vst.msk [vmem:[#allocation2] sm:$0xff] %vm25_vm0, %v251_v0  ;;  %27 = vst.msk [vmem:[#allocation2 + $0x8] sm:$0xff] %vm25_vm0, %v251_v0  ;;  %v246_v2 = vld [vmem:[%s326_s1 + $0x8] sm:$0xff]  }
   0x2   :  { %231 = vmatprep.subr.bf16.mxu1 %v251_v0  ;;  %239 = vmatprep.mubr.msk.bf16.mxu1 %vm252_vm1, %v251_v0  ;;  %v28_v3 = vld [vmem:[%s327_s0] sm:$0xff]  ;;  %v29_v4 = vld [vmem:[%s327_s0 + $0x8] sm:$0xff]  ;;  %v249_v8 = vld [vmem:[%s328_s3 + $0x10] sm:$0xff]  }
   0x3   :  { %224 = vmatpush3.bf16.msra.mxu0 %v245_v1  ;;  %v247_v5 = vld [vmem:[%s328_s3] sm:$0xff]   ;;  %v248_v6 = vld [vmem:[%s328_s3 + $0x8] sm:$0xff]   ;;  %v30_v7 = vpack.c.bf16 %v29_v4, %v28_v3  ;;  %v250_v9 = vld [vmem:[%s328_s3 + $0x18] sm:$0xff]  }
   0x4   :  { %225 = vmatprep.subr.bf16.mxu0 %v251_v0  ;;  %232 = vmatpush3.bf16.msra.mxu1 %v247_v5  ;;  %v205_v10 = vld [vmem:[%s329_s2] ss:$0 sm:$0xff] }
   0x5   :  { %233 = vmatprep.subr.bf16.mxu1 %v251_v0  ;;  %v214_v28 = vld [vmem:[%s330_s4] ss:$0 sm:$0xff] }
   0x7   :  { %226 = vmatpush3.bf16.msra.mxu0 %v246_v2 }
   0x8   :  { %234 = vmatpush3.bf16.msra.mxu1 %v248_v6  ;;  %v101_v20 = vld [vmem:[#allocation2] sm:$0xff]  ;;  %v102_v22 = vld [vmem:[#allocation2 + $0x8] sm:$0xff] }
   0x9   :  { %235 = vmatprep.subr.bf16.mxu1 %v251_v0 }
   0xa   :  { %228 = vmatmul.mubr.msk.bf16.vlgmr.msra.gmra.mrb[0].mxu0 %vm25_vm0, %v30_v7 }
   0xc   :  { %236 = vmatpush3.bf16.msra.mxu1 %v249_v8 }
   0xd   :  { %237 = vmatprep.subr.bf16.mxu1 %v251_v0 }
  0x10   :  { %238 = vmatpush3.bf16.msra.mxu1 %v250_v9 }
  0xdd   :  { %v92_v11 = vpop.f32.mrb[0].mxu0 }
  0xde   :  { %v93_v12 = vadd.f32 %v205_v10, %v92_v11  ;;  %v229_v13 = vpop.f32.mrb[1].mxu0 }
  0xdf   :  { %v95_v14 = vpop.f32.mrb[2].mxu0 }
  0xe0   :  { %v96_v15 = vadd.f32 %v205_v10, %v95_v14  ;;  %v230_v16 = vpop.f32.mrb[3].mxu0  ;;  %v99_v17 = vmax.f32 %v93_v12, 0.0 }
  0xe2   :  { %v100_v18 = vmax.f32 %v96_v15, 0.0 }
  0xe4   :  { %v103_v19 = vpack.c.bf16 %v100_v18, %v99_v17 }
  0xe6   :  { %240 = vmatmul.mubr.msk.bf16.vlgmr.msra.gmra.mrb[0].mxu1 %vm136_vm2, %v103_v19 }
 0x1b9   :  { %v174_v21 = vpop.f32.mrb[0].mxu1 }
 0x1ba   :  { %v181_v23 = vadd.f32 %v174_v21, %v101_v20  ;;  %v241_v24 = vpop.f32.mrb[1].mxu1 }
 0x1bb   :  { %v177_v25 = vpop.f32.mrb[2].mxu1 }
 0x1bc   :  { %183 = vst.msk [vmem:[#allocation2] sm:$0xff] %vm25_vm0, %v181_v23  ;;  %v182_v26 = vadd.f32 %v177_v25, %v102_v22  ;;  %v242_v27 = vpop.f32.mrb[3].mxu1 }
 0x1be   :  { %184 = vst.msk [vmem:[#allocation2 + $0x8] sm:$0xff] %vm25_vm0, %v182_v26 }
 0x1c3   :  { %v188_v29 = vld [vmem:[#allocation2] sm:$0xff] }
 0x1c4   :  { %v197_v30 = vadd.f32 %v214_v28, %v188_v29 }
 0x1c5   :  { %v189_v31 = vld [vmem:[#allocation2 + $0x8] sm:$0xff] }
 0x1c6   :  { %199 = vst.msk [vmem:[%s331_s5] sm:$0xff] %vm25_vm0, %v197_v30  ;;  %v198_v32 = vadd.f32 %v214_v28, %v189_v31 }
 0x1c8   :  { %200 = vst.msk [vmem:[%s331_s5 + $0x8] sm:$0xff] %vm25_vm0, %v198_v32 }

// kernel: transformer_forward.51
= control target key start
LH: loop header
LB: loop body
LE: loop exit
PB: predicated region body
PF: predicated region fallthrough
CT: control target
= control target key end

     0   :  { %vm19_vm0 = vcmask 523264   ;;  %v132_v0 = vmov 0.0   ;;  %vm133_vm1 = vmmov 0   ;;  %vm43_vm2 = vcmask 261120   ;;  %s181_s1 = inlined_call_operand.vmem [shape: bf16[32,64], index: 1, kind: input, shape index: {}]   ;;  %s182_s0 = inlined_call_operand.vmem [shape: f32[16,32], index: 0, kind: input, shape index: {}]   ;;  %s183_s2 = inlined_call_operand.vmem [shape: f32[1,64], index: 2, kind: input, shape index: {}]   ;;  %s184_s3 = inlined_call_operand.vmem [shape: f32[16,64], index: 3, kind: output, shape index: {}]  }
   0x1   :  { %120 = vmatprep.subr.bf16.mxu0 %v132_v0  ;;  %v130_v1 = vld [vmem:[%s181_s1] sm:$0xff]   ;;  %124 = vmatprep.mubr.msk.bf16.mxu0 %vm133_vm1, %v132_v0  ;;  %20 = vst.msk [vmem:[#allocation2] sm:$0xff] %vm19_vm0, %v132_v0  ;;  %21 = vst.msk [vmem:[#allocation2 + $0x8] sm:$0xff] %vm19_vm0, %v132_v0  ;;  %v131_v2 = vld [vmem:[%s181_s1 + $0x8] sm:$0xff]  }
   0x2   :  { %121 = vmatpush3.bf16.msra.mxu0 %v130_v1  ;;  %v24_v3 = vld [vmem:[%s182_s0] sm:$0xff]  ;;  %v25_v4 = vld [vmem:[%s182_s0 + $0x8] sm:$0xff] }
   0x3   :  { %122 = vmatprep.subr.bf16.mxu0 %v132_v0  ;;  %v26_v5 = vpack.c.bf16 %v25_v4, %v24_v3  ;;  %v116_v14 = vld [vmem:[%s183_s2] ss:$0 sm:$0xff] }
   0x6   :  { %123 = vmatpush3.bf16.msra.mxu0 %v131_v2 }
   0x8   :  { %v22_v6 = vld [vmem:[#allocation2] sm:$0xff]  ;;  %v23_v8 = vld [vmem:[#allocation2 + $0x8] sm:$0xff] }
   0x9   :  { %125 = vmatmul.mubr.msk.bf16.vlgmr.msra.gmra.mrb[0].mxu0 %vm43_vm2, %v26_v5 }
  0xdc   :  { %v81_v7 = vpop.f32.mrb[0].mxu0 }
  0xdd   :  { %v88_v9 = vadd.f32 %v81_v7, %v22_v6  ;;  %v126_v10 = vpop.f32.mrb[1].mxu0 }
  0xde   :  { %v84_v11 = vpop.f32.mrb[2].mxu0 }
  0xdf   :  { %91 = vst.msk [vmem:[#allocation2] sm:$0xff] %vm19_vm0, %v88_v9  ;;  %v89_v12 = vadd.f32 %v84_v11, %v23_v8  ;;  %v127_v13 = vpop.f32.mrb[3].mxu0 }
  0xe1   :  { %92 = vst.msk [vmem:[#allocation2 + $0x8] sm:$0xff] %vm19_vm0, %v89_v12 }
  0xe6   :  { %v96_v15 = vld [vmem:[#allocation2] sm:$0xff] }
  0xe7   :  { %v105_v16 = vadd.f32 %v116_v14, %v96_v15 }
  0xe8   :  { %v97_v17 = vld [vmem:[#allocation2 + $0x8] sm:$0xff] }
  0xe9   :  { %107 = vst.msk [vmem:[%s184_s3] sm:$0xff] %vm19_vm0, %v105_v16  ;;  %v106_v18 = vadd.f32 %v116_v14, %v97_v17 }
  0xeb   :  { %108 = vst.msk [vmem:[%s184_s3 + $0x8] sm:$0xff] %vm19_vm0, %v106_v18 }

// kernel: transformer_forward.67
= control target key start
LH: loop header
LB: loop body
LE: loop exit
PB: predicated region body
PF: predicated region fallthrough
CT: control target
= control target key end

     0   :  { %vm24_vm0 = vcmask 261120   ;;  %s185_s0 = inlined_call_operand.vmem [shape: f32[16,32], index: 0, kind: input, shape index: {}]   ;;  %s186_s1 = inlined_call_operand.vmem [shape: f32[16,32], index: 1, kind: input, shape index: {}]   ;;  %s187_s2 = inlined_call_operand.vmem [shape: f32[1,32], index: 2, kind: input, shape index: {}]   ;;  %s188_s3 = inlined_call_operand.vmem [shape: f32[1,32], index: 3, kind: input, shape index: {}]   ;;  %s189_s4 = inlined_call_operand.hbm [shape: f32[16,32], index: 4, kind: output, shape index: {}]  }
   0x1   :  { %v18_v0 = vld [vmem:[%s185_s0] sm:$0xff]  ;;  %v19_v2 = vld [vmem:[%s185_s0 + $0x8] sm:$0xff] }
   0x2   :  { %v20_v1 = vld [vmem:[%s186_s1] sm:$0xff]  ;;  %v21_v4 = vld [vmem:[%s186_s1 + $0x8] sm:$0xff] }
   0x3   :  { %v22_v3 = vadd.f32 %v20_v1, %v18_v0 }
   0x4   :  { %9 = vsyncpa [#allocation3], 0  ;;  %v23_v5 = vadd.f32 %v21_v4, %v19_v2  ;;  %v88_v25 = vld [vmem:[%s187_s2] ss:$0 sm:$0xff]  ;;  %s121_s25 = smov [#allocation2]  }
   0x5   :  { %v25_v6 = vsel %vm24_vm0, %v22_v3, 0.0  ;;  %v89_v27 = vld [vmem:[%s188_s3] ss:$0 sm:$0xff]  ;;  %s77_s26 = sshll.u32 %s121_s25, 4  ;;  %s78_s26 = int_to_ptr.vmem [resolvable:$true] %s77_s26 }
   0x6   :  { %26 = vadd.xlane.f32.xlu0 %v25_v6  ;;  %v28_v7 = vsel %vm24_vm0, %v23_v5, 0.0  ;;  %s97_s27 = scalar_lea.vmem %s78_s26, 256  ;;  %p102_p1 = scmp.lt.s32.totalorder %s78_s26, %s78_s26 }
   0x7   :  { %p98_p0 = scmp.ne.s32.totalorder %s78_s26, %s97_s27  ;;  %p103_p2 = scmp.lt.s32.totalorder %s97_s27, %s97_s27 }
   0x9   :  { %p104_p3 = por %p103_p2, %p102_p1 }
   0xa   :  { %29 = vadd.xlane.f32.xlu0 %v28_v7 }
   0xb   :  { %p105_p4 = pnand %p104_p3, %p98_p0 }
  0x93   :  { %v27_v8 = vpop.xlane.xlu0 %26 }
  0x94   :  { %v32_v9 = vmul.f32 0.03125, %v27_v8 }
  0x96   :  { %v34_v10 = vsub.f32 %v22_v3, %v32_v9 }
  0x97   :  { %v30_v11 = vpop.xlane.xlu0 %29 }
  0x98   :  { %v33_v12 = vmul.f32 0.03125, %v30_v11  ;;  %v36_v13 = vmul.f32 %v34_v10, %v34_v10 }
  0x9a   :  { %v35_v14 = vsub.f32 %v23_v5, %v33_v12  ;;  %v38_v15 = vsel %vm24_vm0, %v36_v13, 0.0 }
  0x9b   :  { %39 = vadd.xlane.f32.xlu1 %v38_v15 }
  0x9c   :  { %v37_v16 = vmul.f32 %v35_v14, %v35_v14 }
  0x9e   :  { %v41_v17 = vsel %vm24_vm0, %v37_v16, 0.0 }
  0x9f   :  { %42 = vadd.xlane.f32.xlu1 %v41_v17 }
 0x128   :  { %v40_v18 = vpop.xlane.xlu1 %39 }
 0x129   :  { %v44_v19 = vmul.f32 0.03125, %v40_v18 }
 0x12b   :  { %v46_v20 = vadd.f32 1e-05, %v44_v19 }
 0x12c   :  { %v43_v21 = vpop.xlane.xlu1 %42 }
 0x12d   :  { %93 = vrsqrt.f32 %v46_v20  ;;  %v45_v22 = vmul.f32 0.03125, %v43_v21 }
 0x12f   :  { %v47_v23 = vadd.f32 1e-05, %v45_v22 }
 0x131   :  { %95 = vrsqrt.f32 %v47_v23 }
 0x137   :  { %v94_v24 = vpop.eup %93 }
 0x138   :  { %v50_v26 = vmul.f32 %v94_v24, %v34_v10 }
 0x13a   :  { %v59_v28 = vmul.f32 %v88_v25, %v50_v26 }
 0x13b   :  { %v96_v29 = vpop.eup %95 }
 0x13c   :  { %v51_v30 = vmul.f32 %v96_v29, %v35_v14  ;;  %v68_v31 = vadd.f32 %v89_v27, %v59_v28 }
 0x13e   :  { %v60_v32 = vmul.f32 %v88_v25, %v51_v30  ;;  %70 = vst.msk [vmem:[#allocation2] sm:$0xff] %vm24_vm0, %v68_v31 }
 0x140   :  { %v69_v33 = vadd.f32 %v89_v27, %v60_v32 }
 0x142   :  { %71 = vst.msk [vmem:[#allocation2 + $0x8] sm:$0xff] %vm24_vm0, %v69_v33 }
 0x143   :  { %108 = shalt.err (!%p105_p4)
}
 0x144   :  { %s109_s28 = scalar_lea.hbm %s189_s4, 256 }
 0x145   :  { %p110_p5 = scmp.ne.s32.totalorder %s189_s4, %s109_s28  ;;  %p113_p6 = scmp.lt.u32.totalorder %s109_s28, %s189_s4 }
 0x147   :  { %p115_p7 = pnand %p113_p6, %p110_p5 }
 0x149   :  { %118 = shalt.err (!%p115_p7)
}
 0x14a   :  { %s122_s7 = smov 128   ;;  %s123_s8 = smov 8  }
 0x14b   :  { %83 = dma.vmem_to_hbm [thread:$0]  %s78_s26, 256, %s189_s4, [#allocation3], %s122_s7, %s122_s7, %s123_s8  }
 0x14c   :  { %119 = dma.done.wait [#allocation3], 256  }
 0x14d   :  { %120 = vsyncadd [#allocation3], 4294967040 }
 0x14e   :  { %87 = vsyncpa [#allocation3], 1 }

// kernel: transformer_forward.52
= control target key start
LH: loop header
LB: loop body
LE: loop exit
PB: predicated region body
PF: predicated region fallthrough
CT: control target
= control target key end

     0   :  { %s639_s12 = smov 0   ;;  %s641_s13 = smov 0   ;;  %s696_s0 = inlined_call_operand.vmem [shape: f32[8,8,8], index: 0, kind: input, shape index: {}]   ;;  %s697_s1 = inlined_call_operand.vmem [shape: f32[8,8,8], index: 1, kind: input, shape index: {}]   ;;  %s698_s2 = inlined_call_operand.vmem [shape: f32[8,8,8], index: 2, kind: input, shape index: {}]   ;;  %s699_s3 = inlined_call_operand.vmem [shape: f32[8,8,8], index: 3, kind: output, shape index: {}]  }
   0x1   :  { %s643_s14 = smov 0  }
   0x2 LB: > { %s32_s15 = sadd.s32 1, %s609_s13  ;;  %p530_p0 = scmp.ge.s32.totalorder %s613_s14, 1  ;;  %s613_s14 = sphi %s643_s14, %s13_s14   ;;  %s609_s13 = sphi %s641_s13, %s701_s13   ;;  %s605_s12 = sphi %s639_s12, %s700_s12  }
   0x3   : > { %p34_p1 = scmp.ge.s32.totalorder %s32_s15, 8  ;;  %p190_p2 = scmp.lt.s32.totalorder %s613_s14, 9 }
   0x5   : > { %s703_s15 = smov (%p34_p1, %s32_s15), 0  ;;  %p191_p3 = pnand %p530_p0, %p190_p2 }
   0x6   : > { %p232_p4 = scmp.lt.s32.totalorder (!%p191_p3), %s605_s12, 7  ;;  %vm268_vm0 = vcmask (!%p191_p3), 64512   ;;  %v615_v0 = vmov (!%p191_p3), 0.0   ;;  %vm616_vm1 = vmmov (!%p191_p3), 0   ;;  %vm265_vm2 = vcmask (!%p191_p3), 7168  }
   0x7   : > { %194 = sbr.rel (%p191_p3) target bundleno = 823 (0x337), region = 32  ;;  %543 = vmatprep.subr.bf16.mxu0 (!%p191_p3), %v615_v0  ;;  %269 = vst.msk [vmem:[#allocation4] sm:$0xff] (!%p191_p3), %vm268_vm0, %v615_v0  ;;  %545 = vmatprep.mubr.msk.bf16.mxu0 (!%p191_p3), %vm616_vm1, %v615_v0  ;;  %v617_v7 = vmov (!%p191_p3), -inf   ;;  %v618_v13 = vmov (!%p191_p3), 0   ;;  %vm359_vm3 = vcmask (!%p191_p3), 1043456  }
   0x8   : > { %549 = vmatprep.subr.bf16.mxu1 (!%p191_p3), %v615_v0  ;;  %551 = vmatprep.mubr.msk.bf16.mxu1 (!%p191_p3), %vm616_vm1, %v615_v0  ;;  %266 = vst.msk [vmem:[#allocation2] sm:$0xff] (!%p191_p3), %vm265_vm2, %v617_v7  ;;  %267 = vst.msk [vmem:[#allocation3] sm:$0xff] (!%p191_p3), %vm265_vm2, %v615_v0 }
   0x9   : > { %583 = vset.pattern.permute.xlu0 (!%p191_p3), %v618_v13  ;;  %584 = vset.pattern.permute.xlu1 (!%p191_p3), %v618_v13 }
   0xe   : > { %s705_s12 = smov (!%p232_p4, %s605_s12), 7  ;;  %v347_v34 = vld [vmem:[#allocation4] sm:$0xff] }
   0xf   : > { %s658_s16 = sshll.u32 %s705_s12, 3  ;;  %v323_v14 = vld [vmem:[#allocation2] sm:$0xff]  ;;  %v339_v29 = vld [vmem:[#allocation3] sm:$0xff] }
  0x10   : > { %s245_s19 = scalar_lea.vmem %s697_s1, %s658_s16  ;;  %s238_s22 = scalar_lea.vmem %s696_s0, %s658_s16 }
  0x11   : > { %v271_v1 = vld [vmem:[%s245_s19] sm:$0xff]  ;;  %s252_s25 = scalar_lea.vmem %s698_s2, %s658_s16  ;;  %s259_s28 = scalar_lea.vmem %s699_s3, %s658_s16 }
  0x12   : > { %v275_v2 = vpack.c.bf16 %v271_v1, %v271_v1  ;;  %v270_v3 = vld [vmem:[%s238_s22] sm:$0xff] }
  0x13   : > { %v273_v5 = vmul.f32 0.35355338, %v270_v3  ;;  %v272_v18 = vld [vmem:[%s252_s25] sm:$0xff] }
  0x14   : > { %v281_v4 = vsel %vm268_vm0, %v275_v2, 0  ;;  %v355_v19 = vpack.c.bf16 %v272_v18, %v272_v18 }
  0x15   : > { %544 = vmatpush3.bf16.xpose.msra.mxu0 %v281_v4  ;;  %v274_v6 = vpack.c.bf16 %v273_v5, %v273_v5 }
  0x16   : > { %v361_v20 = vsel %vm359_vm3, %v355_v19, 0 }
  0x17   : > { %550 = vmatpush3.bf16.msra.mxu1 %v361_v20 }
  0x1c   : > { %546 = vmatmul.mubr.msk.bf16.vlgmr.msra.gmra.mrb[0].mxu0 %vm268_vm0, %v274_v6 }
  0xef   : > { %v317_v8 = vpop.f32.mrb[0].mxu0 }
  0xf0   : > { %v547_v9 = vpop.f32.mrb[1].mxu0  ;;  %v324_v10 = vsel %vm268_vm0, %v317_v8, -inf }
  0xf1   : > { %325 = vmax.xlane.f32.xlu0 %v324_v10  ;;  %v320_v11 = vpop.f32.mrb[2].mxu0 }
  0xf2   : > { %v548_v12 = vpop.f32.mrb[3].mxu0 }
 0x17e   : > { %v326_v15 = vpop.xlane.xlu0 %325 }
 0x17f   : > { %v327_v16 = vmax.f32 %v323_v14, %v326_v15 }
 0x181   : > { %v328_v17 = vsub.f32 %v323_v14, %v327_v16  ;;  %405 = vst.msk [vmem:[#allocation2] sm:$0xff] %vm265_vm2, %v327_v16  ;;  %333 = vperm.xlu0 %583, %v327_v16  }
 0x183   : > { %v329_v27 = vmul.f32 1.442695, %v328_v17 }
 0x200   : > { %v334_v21 = vpop.permute.xlu0 %333 }
 0x201   : > { %v336_v22 = vsub.f32 %v317_v8, %v334_v21 }
 0x203   : > { %v337_v23 = vmul.f32 1.442695, %v336_v22 }
 0x205   : > { %585 = vpow2.f32 %v337_v23 }
 0x206   : > { %587 = vpow2.f32 %v329_v27 }
 0x20f   : > { %v586_v24 = vpop.eup %585 }
 0x210   : > { %v341_v25 = vsel %vm268_vm0, %v586_v24, 0.0  ;;  %v354_v26 = vpack.c.bf16 %v586_v24, %v586_v24  ;;  %v588_v28 = vpop.eup %587 }
 0x211   : > { %342 = vadd.xlane.f32.xlu1 %v341_v25  ;;  %v340_v30 = vmul.f32 %v588_v28, %v339_v29 }
 0x212   : > { %552 = vmatmul.mubr.msk.bf16.vlgmr.msra.gmra.mrb[0].mxu1 %vm268_vm0, %v354_v26 }
 0x222   : > { %350 = vperm.xlu1 %584, %v588_v28  }
 0x29e   : > { %v343_v31 = vpop.xlane.xlu1 %342 }
 0x29f   : > { %v344_v32 = vadd.f32 %v343_v31, %v340_v30 }
 0x2a1   : > { %346 = vst.msk [vmem:[#allocation3] sm:$0xff] %vm265_vm2, %v344_v32 }
 0x2a2   : > { %v351_v35 = vpop.permute.xlu1 %350 }
 0x2a3   : > { %v353_v36 = vmul.f32 %v351_v35, %v347_v34 }
 0x2a8   : > { %v410_v33 = vld [vmem:[#allocation3] sm:$0xff] }
 0x2a9   : > { %413 = vperm.xlu1 %584, %v410_v33  }
 0x2e5   : > { %v397_v37 = vpop.f32.mrb[0].mxu1 }
 0x2e6   : > { %v403_v38 = vadd.f32 %v397_v37, %v353_v36  ;;  %v553_v39 = vpop.f32.mrb[1].mxu1 }
 0x2e7   : > { %v400_v40 = vpop.f32.mrb[2].mxu1 }
 0x2e8   : > { %404 = vst.msk [vmem:[#allocation4] sm:$0xff] %vm268_vm0, %v403_v38  ;;  %v554_v41 = vpop.f32.mrb[3].mxu1 }
 0x2ef   : > { %v409_v44 = vld [vmem:[#allocation4] sm:$0xff] }
 0x328   : > { %v414_v42 = vpop.permute.xlu1 %413 }
 0x329   : > { %589 = vrcp.f32 %v414_v42 }
 0x333   : > { %v590_v43 = vpop.eup %589 }
 0x334   : > { %v417_v45 = vmul.f32 %v590_v43, %v409_v44 }
 0x336   : > { %418 = vst.msk [vmem:[%s259_s28] sm:$0xff] %vm268_vm0, %v417_v45 }
 0x337 PF: > { %s13_s14 = sadd.s32 1, %s613_s14   ;;  %s700_s12 = smov %s609_s13 }
 0x338   : > { %p10_p5 = scmp.ge.s32.totalorder %s13_s14, 10   ;;  %s701_s13 = smov %s703_s15 }
 0x33a   :  { %12 = sbr.rel (!%p10_p5) target bundleno = 2 (0x2), region = 76 }

</bundles_post_ra>
